<compile_context>
chip_gen: v6e
topology: v6e:2x2x1
jax: 0.10.0
libtpu: 0.0.40
codegen_flags: <defaults>
</compile_context>

<pallas_src>
import jax
import jax.numpy as jnp
from jax.experimental import pallas as pl
from jax.experimental.pallas import tpu as pltpu


_VMEM_BUDGET = 40 * 1024 * 1024   # working-set target (safe on v7x's 64 MiB physical VMEM)
_VMEM_LIMIT = 48 * 1024 * 1024    # scoped-VMEM limit handed to Mosaic


def _round_up(x, m):
    return (x + m - 1) // m * m


def _pick_time_tiling(T, max_chunk):
    """Chunk the time axis into ~equal pieces <= max_chunk; pad T up if needed
    (never fall back to chunk=1 for awkward / prime T)."""
    max_chunk = max(1, min(T, max_chunk))
    n_steps = -(-T // max_chunk)           # grid steps along time
    chunk = -(-T // n_steps)               # smallest chunk covering T in n_steps
    return chunk, chunk * n_steps          # (chunk, padded T)


def _max_chunk_for_budget(TB, Hp, w_bytes, io_bytes=4, budget=_VMEM_BUDGET):
    """Largest time chunk whose VMEM working set fits the budget."""
    fixed = Hp * 3 * Hp * w_bytes          # single-buffered resident W_hh scratch
    fixed += TB * Hp * 4                   # carried hidden state (f32)
    fixed += 2 * Hp * 4                    # (1, Hp) n-gate bias (tiny, double-buffered)
    per_t = 2 * (TB * 3 * Hp + TB * Hp) * io_bytes   # double-buffered gi + out per timestep
    return int(max(1, min(32, (budget - fixed) // per_t)))


def _gru_kernel(gi_ref, whh_hbm, bhn_ref, out_ref, w_scr, w_sem, h_scr):
    """One grid step == one (batch block, time chunk).

    gi_ref : (CHUNK, TB, 3*Hp)  hoisted input projection (gate order r, z, n);
                                b_ih and (for r, z) b_hh already folded in.
    whh_hbm: (Hp, 3*Hp) in HBM  fused hidden->hidden weights (pre-transposed);
                                DMA'd once per batch-block sweep (single buffer).
    bhn_ref: (1, Hp)            b_hn, applied only to the n gate inside r*(...).
    out_ref: (CHUNK, TB, Hp)    hidden states for this chunk (time-major).
    w_scr  : (Hp, 3*Hp) VMEM    resident copy of W_hh.
    w_sem  : DMA semaphore for the W_hh copy.
    h_scr  : (TB, Hp)  VMEM     carried hidden state (f32).
    """
    c = pl.program_id(1)   # time-chunk index (the sequential axis)

    @pl.when(c == 0)
    def _():
        # Bring the resident weights into VMEM once per batch-block sweep and
        # reset the hidden state (PyTorch nn.GRU default: h0 = zeros).
        cp = pltpu.make_async_copy(whh_hbm, w_scr, w_sem)
        cp.start()
        cp.wait()
        h_scr[...] = jnp.zeros_like(h_scr)

    # Resident operands: read once per grid step, outside the timestep loop.
    w = w_scr[...]
    b_n = bhn_ref[...]

    hp = h_scr.shape[-1]
    chunk = gi_ref.shape[0]

    # TODO(synk): for H <= ~170 (3*Hp within the MXU staging width) a
    # weight-stationary path (pltpu.matmul_push_rhs once per chunk, then
    # matmul_acc_lhs/matmul_pop per timestep) would avoid re-streaming W_hh
    # through the MXU every serial step; kept on jnp.dot for lowering safety.
    def step(t, h):
        gi = gi_ref[t]                                                  # (TB, 3Hp)
        gh = jnp.dot(h.astype(w.dtype), w,
                     preferred_element_type=jnp.float32)                # (TB, 3Hp)
        # r and z share one fused sigmoid over the contiguous (TB, 2Hp) slice.
        rz = jax.nn.sigmoid(gi[:, :2 * hp] + gh[:, :2 * hp])
        r, z = rz[:, :hp], rz[:, hp:]
        n = jnp.tanh(gi[:, 2 * hp:] + r * (gh[:, 2 * hp:] + b_n))
        h = (1.0 - z) * n + z * h
        out_ref[t] = h.astype(out_ref.dtype)
        return h

    h = h_scr[...]
    if chunk <= 16:
        # Small chunk: fully unrolled static loop (max LLO scheduling visibility).
        for t in range(chunk):
            h = step(t, h)
    else:
        # Large chunk: bounded unroll so the (TB, 3Hp) temporaries don't blow
        # the 64-entry vreg file and spill onto the serial critical path.
        h = jax.lax.fori_loop(0, chunk, step, h, unroll=8)
    h_scr[...] = h


def gru_forward(emb, w_ih, w_hh, b_ih, b_hh, *, matmul_dtype=jnp.float32):
    """emb: [B, T, E] float32. Weights in PyTorch layout:
    w_ih [3H, E], w_hh [3H, H], b_ih [3H], b_hh [3H], gate order (r, z, n).
    Returns (output [B, T, H], hidden [1, B, H]).

    matmul_dtype=jnp.bfloat16 halves the resident W_hh footprint / HBM load and
    runs the MXU at its native bf16 rate (f32 accumulation is kept); the gate
    math and the carried hidden state always stay f32.
    """
    B, T, E = emb.shape
    H = w_hh.shape[1]

    is_bf16 = jnp.dtype(matmul_dtype) == jnp.dtype(jnp.bfloat16)
    bm = 16 if is_bf16 else 8          # bf16 LHS tiles pack 16 sublanes per vreg
    Bp = _round_up(B, bm)              # sublane-pad batch
    Hp = _round_up(H, 128)             # lane-pad hidden (and each gate segment)

    # Batch-block grid axis: split the batch in two when it divides cleanly so
    # v7x's two TensorCores each take half (axis marked "parallel"); harmless
    # on 1-TC chips and it also shrinks the per-step gi/out working set.
    n_bblk = 2 if (Bp >= 2 * bm and Bp % (2 * bm) == 0) else 1
    TB = Bp // n_bblk

    w_bytes = 2 if is_bf16 else 4
    chunk, Tp = _pick_time_tiling(T, _max_chunk_for_budget(TB, Hp, w_bytes))

    # ---- split per-gate (PyTorch gate order r, z, n) ----------------------
    w_ir, w_iz, w_in = jnp.split(w_ih, 3, axis=0)     # each (H, E)
    w_hr, w_hz, w_hn = jnp.split(w_hh, 3, axis=0)     # each (H, H)
    b_ir, b_iz, b_in = jnp.split(b_ih, 3)
    b_hr, b_hz, b_hn = jnp.split(b_hh, 3)

    def pad_cols(wt):                                  # (E|H, H) -> (., Hp)
        return jnp.pad(wt, ((0, 0), (0, Hp - H)))

    def pad_b(b):                                      # (H,) -> (Hp,)
        return jnp.pad(b, (0, Hp - H))

    # ---- hoisted input projection: one big lane-dense matmul outside the
    #      recurrence; biases folded (b_ih always; b_hh for the r, z gates) ---
    w_i_all = jnp.concatenate(
        [pad_cols(w_ir.T), pad_cols(w_iz.T), pad_cols(w_in.T)], axis=1)   # (E, 3Hp)
    b_i_all = jnp.concatenate(
        [pad_b(b_ir + b_hr), pad_b(b_iz + b_hz), pad_b(b_in)])            # (3Hp,)

    x = emb.transpose(1, 0, 2).reshape(T * B, E)                          # time-major
    gi = jnp.dot(x, w_i_all, preferred_element_type=jnp.float32) + b_i_all
    gi = gi.reshape(T, B, 3 * Hp)
    # Zero-pad batch rows and (if the time tiling needs it) trailing timesteps.
    gi = jnp.pad(gi, ((0, Tp - T), (0, Bp - B), (0, 0)))                  # (Tp, Bp, 3Hp)
    # TODO(synk): for long-T HBM-bound cases, stream gi (and the output slab)
    # as bf16 to halve HBM traffic; kept f32 here so results track torch's f32 GRU.

    # ---- fused, padded hidden->hidden weights + the one bias that must stay
    #      inside r * (...) -------------------------------------------------
    def pad_hh(wg):                                    # (H, H) -> (Hp, Hp), (in, out)
        return jnp.pad(wg.T, ((0, Hp - H), (0, Hp - H)))

    w_h_all = jnp.concatenate(
        [pad_hh(w_hr), pad_hh(w_hz), pad_hh(w_hn)], axis=1).astype(matmul_dtype)  # (Hp, 3Hp)
    b_h_n = pad_b(b_hn)[None, :]                                          # (1, Hp)

    out = pl.pallas_call(
        _gru_kernel,
        out_shape=jax.ShapeDtypeStruct((Tp, Bp, Hp), emb.dtype),
        grid_spec=pltpu.PrefetchScalarGridSpec(
            num_scalar_prefetch=0,
            grid=(n_bblk, Tp // chunk),
            in_specs=[
                pl.BlockSpec((chunk, TB, 3 * Hp), lambda b, c: (c, b, 0)),  # gi chunk
                pl.BlockSpec(memory_space=pl.ANY),                          # W_hh stays in HBM
                pl.BlockSpec((1, Hp), lambda b, c: (0, 0)),                 # b_hn (resident)
            ],
            out_specs=pl.BlockSpec((chunk, TB, Hp), lambda b, c: (c, b, 0)),
            scratch_shapes=[
                pltpu.VMEM((Hp, 3 * Hp), matmul_dtype),    # single-buffered resident W_hh
                pltpu.SemaphoreType.DMA,                   # its copy semaphore
                pltpu.VMEM((TB, Hp), jnp.float32),         # carried hidden state
            ],
        ),
        compiler_params=pltpu.CompilerParams(
            # batch blocks are independent (megacore-parallel on v7x);
            # the time axis is the recurrence and must stay sequential.
            dimension_semantics=("parallel", "arbitrary"),
            vmem_limit_bytes=_VMEM_LIMIT,
        ),
    )(gi, w_h_all, b_h_n)

    out_tm = out[:T, :B, :H]                      # time-major, padding stripped
    hidden = out_tm[T - 1][None]                  # (1, B, H) == last hidden state
    output = out_tm.transpose(1, 0, 2)            # (B, T, H): batch_first, as nn.GRU returns
    return output, hidden


class Encoder:
    """JAX/Pallas port of the PyTorch Encoder module."""

    def __init__(self, vocab_size, embedding_dim, units, key):
        k_emb, k_wih, k_whh, k_bih, k_bhh = jax.random.split(key, 5)
        # nn.Embedding default init: N(0, 1)
        self.embedding = jax.random.normal(
            k_emb, (vocab_size, embedding_dim), dtype=jnp.float32)
        # nn.GRU default init: U(-1/sqrt(H), 1/sqrt(H))
        bound = 1.0 / jnp.sqrt(jnp.float32(units))
        self.w_ih = jax.random.uniform(
            k_wih, (3 * units, embedding_dim), jnp.float32, -bound, bound)
        self.w_hh = jax.random.uniform(
            k_whh, (3 * units, units), jnp.float32, -bound, bound)
        self.b_ih = jax.random.uniform(
            k_bih, (3 * units,), jnp.float32, -bound, bound)
        self.b_hh = jax.random.uniform(
            k_bhh, (3 * units,), jnp.float32, -bound, bound)

    def __call__(self, x):
        # x: [B, T] int32 token ids.  Embedding lookup is a glue gather in XLA.
        emb = jnp.take(self.embedding, x, axis=0)          # [B, T, E]
        output, hidden = gru_forward(emb, self.w_ih, self.w_hh, self.b_ih, self.b_hh)
        return output, hidden


def _gru_reference(emb, w_ih, w_hh, b_ih, b_hh):
    """Pure-JAX reference (lax.scan) mirroring torch.nn.GRU semantics."""
    B, T, E = emb.shape
    H = w_hh.shape[1]
    w_ir, w_iz, w_in = jnp.split(w_ih, 3, axis=0)
    w_hr, w_hz, w_hn = jnp.split(w_hh, 3, axis=0)
    b_ir, b_iz, b_in = jnp.split(b_ih, 3)
    b_hr, b_hz, b_hn = jnp.split(b_hh, 3)

    def step(h, x_t):
        r = jax.nn.sigmoid(x_t @ w_ir.T + b_ir + h @ w_hr.T + b_hr)
        z = jax.nn.sigmoid(x_t @ w_iz.T + b_iz + h @ w_hz.T + b_hz)
        n = jnp.tanh(x_t @ w_in.T + b_in + r * (h @ w_hn.T + b_hn))
        h_new = (1.0 - z) * n + z * h
        return h_new, h_new

    h0 = jnp.zeros((B, H), jnp.float32)
    h_last, outs = jax.lax.scan(step, h0, jnp.transpose(emb, (1, 0, 2)))
    return jnp.transpose(outs, (1, 0, 2)), h_last[None]


if __name__ == "__main__":
    key = jax.random.PRNGKey(0)
    k_params, k_tokens = jax.random.split(key)

    vocab_size, embedding_dim, units = 16, 32, 32
    B, T = 2, 8

    enc = Encoder(vocab_size, embedding_dim, units, k_params)
    x = jax.random.randint(k_tokens, (B, T), 0, vocab_size, dtype=jnp.int32)

    output, hidden = enc(x)
    output, hidden = jax.block_until_ready((output, hidden))

    # sanity check against a pure-JAX reference
    emb = jnp.take(enc.embedding, x, axis=0)
    ref_out, ref_hid = _gru_reference(emb, enc.w_ih, enc.w_hh, enc.b_ih, enc.b_hh)
    assert output.shape == (B, T, units)
    assert hidden.shape == (1, B, units)
    assert jnp.allclose(output, ref_out, atol=3e-5, rtol=1e-4)
    assert jnp.allclose(hidden, ref_hid, atol=3e-5, rtol=1e-4)

    print("KERNEL_OK")
</pallas_src>

<mosaic_0001>
module attributes {stable_mosaic.version = 11 : i64} {
  func.func @_gru_kernel(%arg0: i32, %arg1: i32, %arg2: memref<8x8x384xf32, #tpu.memory_space<vmem>>, %arg3: memref<128x384xf32, #tpu.memory_space<any>>, %arg4: memref<1x128xf32, #tpu.memory_space<vmem>>, %arg5: memref<8x8x128xf32, #tpu.memory_space<vmem>>, %arg6: memref<128x384xf32, #tpu.memory_space<vmem>>, %arg7: memref<!tpu.dma_semaphore, #tpu.memory_space<semaphore_mem>>, %arg8: memref<8x128xf32, #tpu.memory_space<vmem>>) attributes {dimension_semantics = [#tpu.dimension_semantics<parallel>, #tpu.dimension_semantics<arbitrary>], iteration_bounds = array<i64: 1, 1>, scalar_prefetch = 0 : i64, scratch_operands = 3 : i64, tpu.core_type = #tpu.core_type<tc>, window_params = [{transform_indices = @transform_0, window_bounds = array<i64: 8, 8, 384>}, {}, {pipeline_mode = #tpu.pipeline_mode<synchronous>, transform_indices = @transform_2, window_bounds = array<i64: 1, 128>}, {transform_indices = @transform_3, window_bounds = array<i64: 8, 8, 128>}]} {
    %c0_i32 = arith.constant 0 : i32
    %0 = arith.cmpi eq, %arg1, %c0_i32 : i32
    %1 = arith.extui %0 : i1 to i32
    %c0_i32_0 = arith.constant 0 : i32
    %2 = arith.cmpi ne, %1, %c0_i32_0 : i32
    scf.if %2 {
      tpu.enqueue_dma source(%arg3 : memref<128x384xf32, #tpu.memory_space<any>>) target(%arg6 : memref<128x384xf32, #tpu.memory_space<vmem>>) target_semaphore(%arg7 : memref<!tpu.dma_semaphore, #tpu.memory_space<semaphore_mem>>)
      tpu.wait_dma2 semaphore(%arg7 : memref<!tpu.dma_semaphore, #tpu.memory_space<semaphore_mem>>) src(%arg3 : memref<128x384xf32, #tpu.memory_space<any>>) dst(%arg6 : memref<128x384xf32, #tpu.memory_space<vmem>>)
      %cst_72 = arith.constant 0.000000e+00 : f32
      %231 = vector.broadcast %cst_72 : f32 to vector<8x128xf32>
      %c0_73 = arith.constant 0 : index
      %c0_74 = arith.constant 0 : index
      %232 = vector.load %arg8[%c0_73, %c0_74] : memref<8x128xf32, #tpu.memory_space<vmem>>, vector<8x128xf32>
      tpu.vector_store %arg8[%c0_73, %c0_74], %231 {strides = array<i32>} : memref<8x128xf32, #tpu.memory_space<vmem>>, vector<8x128xf32>,
    } else {
    }
    %c0 = arith.constant 0 : index
    %c0_1 = arith.constant 0 : index
    %3 = vector.load %arg6[%c0, %c0_1] : memref<128x384xf32, #tpu.memory_space<vmem>>, vector<128x384xf32>
    %c0_2 = arith.constant 0 : index
    %c0_3 = arith.constant 0 : index
    %4 = vector.load %arg4[%c0_2, %c0_3] : memref<1x128xf32, #tpu.memory_space<vmem>>, vector<1x128xf32>
    %c0_4 = arith.constant 0 : index
    %c0_5 = arith.constant 0 : index
    %5 = vector.load %arg8[%c0_4, %c0_5] : memref<8x128xf32, #tpu.memory_space<vmem>>, vector<8x128xf32>
    %c0_6 = arith.constant 0 : index
    %c0_7 = arith.constant 0 : index
    %c0_8 = arith.constant 0 : index
    %6 = vector.load %arg2[%c0_6, %c0_7, %c0_8] : memref<8x8x384xf32, #tpu.memory_space<vmem>>, vector<1x8x384xf32>
    %7 = vector.shape_cast %6 : vector<1x8x384xf32> to vector<8x384xf32>
    %cst = arith.constant dense<0.000000e+00> : vector<8x384xf32>
    %8 = tpu.matmul %5, %3, %cst {dimension_numbers = #tpu.dot_dimension_numbers<[1], [0], [0], [1], [0, 0, 1, 1], [], []>} : vector<8x128xf32>, vector<128x384xf32>, vector<8x384xf32> -> vector<8x384xf32>
    %9 = vector.extract_strided_slice %7 {offsets = [0, 0], sizes = [8, 256], strides = [1, 1]} : vector<8x384xf32> to vector<8x256xf32>
    %10 = vector.extract_strided_slice %8 {offsets = [0, 0], sizes = [8, 256], strides = [1, 1]} : vector<8x384xf32> to vector<8x256xf32>
    %11 = arith.addf %9, %10 : vector<8x256xf32>
    %12 = arith.negf %11 : vector<8x256xf32>
    %13 = math.exp %12 : vector<8x256xf32>
    %cst_9 = arith.constant 1.000000e+00 : f32
    %14 = vector.broadcast %cst_9 : f32 to vector<8x256xf32>
    %15 = arith.addf %14, %13 : vector<8x256xf32>
    %16 = arith.divf %14, %15 : vector<8x256xf32>
    %17 = vector.extract_strided_slice %16 {offsets = [0, 0], sizes = [8, 128], strides = [1, 1]} : vector<8x256xf32> to vector<8x128xf32>
    %18 = vector.extract_strided_slice %16 {offsets = [0, 128], sizes = [8, 128], strides = [1, 1]} : vector<8x256xf32> to vector<8x128xf32>
    %19 = vector.extract_strided_slice %7 {offsets = [0, 256], sizes = [8, 128], strides = [1, 1]} : vector<8x384xf32> to vector<8x128xf32>
    %20 = vector.extract_strided_slice %8 {offsets = [0, 256], sizes = [8, 128], strides = [1, 1]} : vector<8x384xf32> to vector<8x128xf32>
    %21 = vector.broadcast %4 : vector<1x128xf32> to vector<8x128xf32>
    %22 = arith.addf %20, %21 : vector<8x128xf32>
    %23 = arith.mulf %17, %22 : vector<8x128xf32>
    %24 = arith.addf %19, %23 : vector<8x128xf32>
    %25 = math.tanh %24 : vector<8x128xf32>
    %cst_10 = arith.constant 1.000000e+00 : f32
    %26 = vector.broadcast %cst_10 : f32 to vector<8x128xf32>
    %27 = arith.subf %26, %18 : vector<8x128xf32>
    %28 = arith.mulf %27, %25 : vector<8x128xf32>
    %29 = arith.mulf %18, %5 : vector<8x128xf32>
    %30 = arith.addf %28, %29 : vector<8x128xf32>
    %c0_11 = arith.constant 0 : index
    %c0_12 = arith.constant 0 : index
    %c0_13 = arith.constant 0 : index
    %31 = vector.load %arg5[%c0_11, %c0_12, %c0_13] : memref<8x8x128xf32, #tpu.memory_space<vmem>>, vector<1x8x128xf32>
    %32 = vector.shape_cast %31 : vector<1x8x128xf32> to vector<8x128xf32>
    %33 = vector.shape_cast %30 : vector<8x128xf32> to vector<1x8x128xf32>
    tpu.vector_store %arg5[%c0_11, %c0_12, %c0_13], %33 {strides = array<i32>} : memref<8x8x128xf32, #tpu.memory_space<vmem>>, vector<1x8x128xf32>,
    %c1 = arith.constant 1 : index
    %c0_14 = arith.constant 0 : index
    %c0_15 = arith.constant 0 : index
    %34 = vector.load %arg2[%c1, %c0_14, %c0_15] : memref<8x8x384xf32, #tpu.memory_space<vmem>>, vector<1x8x384xf32>
    %35 = vector.shape_cast %34 : vector<1x8x384xf32> to vector<8x384xf32>
    %cst_16 = arith.constant dense<0.000000e+00> : vector<8x384xf32>
    %36 = tpu.matmul %30, %3, %cst_16 {dimension_numbers = #tpu.dot_dimension_numbers<[1], [0], [0], [1], [0, 0, 1, 1], [], []>} : vector<8x128xf32>, vector<128x384xf32>, vector<8x384xf32> -> vector<8x384xf32>
    %37 = vector.extract_strided_slice %35 {offsets = [0, 0], sizes = [8, 256], strides = [1, 1]} : vector<8x384xf32> to vector<8x256xf32>
    %38 = vector.extract_strided_slice %36 {offsets = [0, 0], sizes = [8, 256], strides = [1, 1]} : vector<8x384xf32> to vector<8x256xf32>
    %39 = arith.addf %37, %38 : vector<8x256xf32>
    %40 = arith.negf %39 : vector<8x256xf32>
    %41 = math.exp %40 : vector<8x256xf32>
    %cst_17 = arith.constant 1.000000e+00 : f32
    %42 = vector.broadcast %cst_17 : f32 to vector<8x256xf32>
    %43 = arith.addf %42, %41 : vector<8x256xf32>
    %44 = arith.divf %42, %43 : vector<8x256xf32>
    %45 = vector.extract_strided_slice %44 {offsets = [0, 0], sizes = [8, 128], strides = [1, 1]} : vector<8x256xf32> to vector<8x128xf32>
    %46 = vector.extract_strided_slice %44 {offsets = [0, 128], sizes = [8, 128], strides = [1, 1]} : vector<8x256xf32> to vector<8x128xf32>
    %47 = vector.extract_strided_slice %35 {offsets = [0, 256], sizes = [8, 128], strides = [1, 1]} : vector<8x384xf32> to vector<8x128xf32>
    %48 = vector.extract_strided_slice %36 {offsets = [0, 256], sizes = [8, 128], strides = [1, 1]} : vector<8x384xf32> to vector<8x128xf32>
    %49 = vector.broadcast %4 : vector<1x128xf32> to vector<8x128xf32>
    %50 = arith.addf %48, %49 : vector<8x128xf32>
    %51 = arith.mulf %45, %50 : vector<8x128xf32>
    %52 = arith.addf %47, %51 : vector<8x128xf32>
    %53 = math.tanh %52 : vector<8x128xf32>
    %cst_18 = arith.constant 1.000000e+00 : f32
    %54 = vector.broadcast %cst_18 : f32 to vector<8x128xf32>
    %55 = arith.subf %54, %46 : vector<8x128xf32>
    %56 = arith.mulf %55, %53 : vector<8x128xf32>
    %57 = arith.mulf %46, %30 : vector<8x128xf32>
    %58 = arith.addf %56, %57 : vector<8x128xf32>
    %c1_19 = arith.constant 1 : index
    %c0_20 = arith.constant 0 : index
    %c0_21 = arith.constant 0 : index
    %59 = vector.load %arg5[%c1_19, %c0_20, %c0_21] : memref<8x8x128xf32, #tpu.memory_space<vmem>>, vector<1x8x128xf32>
    %60 = vector.shape_cast %59 : vector<1x8x128xf32> to vector<8x128xf32>
    %61 = vector.shape_cast %58 : vector<8x128xf32> to vector<1x8x128xf32>
    tpu.vector_store %arg5[%c1_19, %c0_20, %c0_21], %61 {strides = array<i32>} : memref<8x8x128xf32, #tpu.memory_space<vmem>>, vector<1x8x128xf32>,
    %c2 = arith.constant 2 : index
    %c0_22 = arith.constant 0 : index
    %c0_23 = arith.constant 0 : index
    %62 = vector.load %arg2[%c2, %c0_22, %c0_23] : memref<8x8x384xf32, #tpu.memory_space<vmem>>, vector<1x8x384xf32>
    %63 = vector.shape_cast %62 : vector<1x8x384xf32> to vector<8x384xf32>
    %cst_24 = arith.constant dense<0.000000e+00> : vector<8x384xf32>
    %64 = tpu.matmul %58, %3, %cst_24 {dimension_numbers = #tpu.dot_dimension_numbers<[1], [0], [0], [1], [0, 0, 1, 1], [], []>} : vector<8x128xf32>, vector<128x384xf32>, vector<8x384xf32> -> vector<8x384xf32>
    %65 = vector.extract_strided_slice %63 {offsets = [0, 0], sizes = [8, 256], strides = [1, 1]} : vector<8x384xf32> to vector<8x256xf32>
    %66 = vector.extract_strided_slice %64 {offsets = [0, 0], sizes = [8, 256], strides = [1, 1]} : vector<8x384xf32> to vector<8x256xf32>
    %67 = arith.addf %65, %66 : vector<8x256xf32>
    %68 = arith.negf %67 : vector<8x256xf32>
    %69 = math.exp %68 : vector<8x256xf32>
    %cst_25 = arith.constant 1.000000e+00 : f32
    %70 = vector.broadcast %cst_25 : f32 to vector<8x256xf32>
    %71 = arith.addf %70, %69 : vector<8x256xf32>
    %72 = arith.divf %70, %71 : vector<8x256xf32>
    %73 = vector.extract_strided_slice %72 {offsets = [0, 0], sizes = [8, 128], strides = [1, 1]} : vector<8x256xf32> to vector<8x128xf32>
    %74 = vector.extract_strided_slice %72 {offsets = [0, 128], sizes = [8, 128], strides = [1, 1]} : vector<8x256xf32> to vector<8x128xf32>
    %75 = vector.extract_strided_slice %63 {offsets = [0, 256], sizes = [8, 128], strides = [1, 1]} : vector<8x384xf32> to vector<8x128xf32>
    %76 = vector.extract_strided_slice %64 {offsets = [0, 256], sizes = [8, 128], strides = [1, 1]} : vector<8x384xf32> to vector<8x128xf32>
    %77 = vector.broadcast %4 : vector<1x128xf32> to vector<8x128xf32>
    %78 = arith.addf %76, %77 : vector<8x128xf32>
    %79 = arith.mulf %73, %78 : vector<8x128xf32>
    %80 = arith.addf %75, %79 : vector<8x128xf32>
    %81 = math.tanh %80 : vector<8x128xf32>
    %cst_26 = arith.constant 1.000000e+00 : f32
    %82 = vector.broadcast %cst_26 : f32 to vector<8x128xf32>
    %83 = arith.subf %82, %74 : vector<8x128xf32>
    %84 = arith.mulf %83, %81 : vector<8x128xf32>
    %85 = arith.mulf %74, %58 : vector<8x128xf32>
    %86 = arith.addf %84, %85 : vector<8x128xf32>
    %c2_27 = arith.constant 2 : index
    %c0_28 = arith.constant 0 : index
    %c0_29 = arith.constant 0 : index
    %87 = vector.load %arg5[%c2_27, %c0_28, %c0_29] : memref<8x8x128xf32, #tpu.memory_space<vmem>>, vector<1x8x128xf32>
    %88 = vector.shape_cast %87 : vector<1x8x128xf32> to vector<8x128xf32>
    %89 = vector.shape_cast %86 : vector<8x128xf32> to vector<1x8x128xf32>
    tpu.vector_store %arg5[%c2_27, %c0_28, %c0_29], %89 {strides = array<i32>} : memref<8x8x128xf32, #tpu.memory_space<vmem>>, vector<1x8x128xf32>,
    %c3 = arith.constant 3 : index
    %c0_30 = arith.constant 0 : index
    %c0_31 = arith.constant 0 : index
    %90 = vector.load %arg2[%c3, %c0_30, %c0_31] : memref<8x8x384xf32, #tpu.memory_space<vmem>>, vector<1x8x384xf32>
    %91 = vector.shape_cast %90 : vector<1x8x384xf32> to vector<8x384xf32>
    %cst_32 = arith.constant dense<0.000000e+00> : vector<8x384xf32>
    %92 = tpu.matmul %86, %3, %cst_32 {dimension_numbers = #tpu.dot_dimension_numbers<[1], [0], [0], [1], [0, 0, 1, 1], [], []>} : vector<8x128xf32>, vector<128x384xf32>, vector<8x384xf32> -> vector<8x384xf32>
    %93 = vector.extract_strided_slice %91 {offsets = [0, 0], sizes = [8, 256], strides = [1, 1]} : vector<8x384xf32> to vector<8x256xf32>
    %94 = vector.extract_strided_slice %92 {offsets = [0, 0], sizes = [8, 256], strides = [1, 1]} : vector<8x384xf32> to vector<8x256xf32>
    %95 = arith.addf %93, %94 : vector<8x256xf32>
    %96 = arith.negf %95 : vector<8x256xf32>
    %97 = math.exp %96 : vector<8x256xf32>
    %cst_33 = arith.constant 1.000000e+00 : f32
    %98 = vector.broadcast %cst_33 : f32 to vector<8x256xf32>
    %99 = arith.addf %98, %97 : vector<8x256xf32>
    %100 = arith.divf %98, %99 : vector<8x256xf32>
    %101 = vector.extract_strided_slice %100 {offsets = [0, 0], sizes = [8, 128], strides = [1, 1]} : vector<8x256xf32> to vector<8x128xf32>
    %102 = vector.extract_strided_slice %100 {offsets = [0, 128], sizes = [8, 128], strides = [1, 1]} : vector<8x256xf32> to vector<8x128xf32>
    %103 = vector.extract_strided_slice %91 {offsets = [0, 256], sizes = [8, 128], strides = [1, 1]} : vector<8x384xf32> to vector<8x128xf32>
    %104 = vector.extract_strided_slice %92 {offsets = [0, 256], sizes = [8, 128], strides = [1, 1]} : vector<8x384xf32> to vector<8x128xf32>
    %105 = vector.broadcast %4 : vector<1x128xf32> to vector<8x128xf32>
    %106 = arith.addf %104, %105 : vector<8x128xf32>
    %107 = arith.mulf %101, %106 : vector<8x128xf32>
    %108 = arith.addf %103, %107 : vector<8x128xf32>
    %109 = math.tanh %108 : vector<8x128xf32>
    %cst_34 = arith.constant 1.000000e+00 : f32
    %110 = vector.broadcast %cst_34 : f32 to vector<8x128xf32>
    %111 = arith.subf %110, %102 : vector<8x128xf32>
    %112 = arith.mulf %111, %109 : vector<8x128xf32>
    %113 = arith.mulf %102, %86 : vector<8x128xf32>
    %114 = arith.addf %112, %113 : vector<8x128xf32>
    %c3_35 = arith.constant 3 : index
    %c0_36 = arith.constant 0 : index
    %c0_37 = arith.constant 0 : index
    %115 = vector.load %arg5[%c3_35, %c0_36, %c0_37] : memref<8x8x128xf32, #tpu.memory_space<vmem>>, vector<1x8x128xf32>
    %116 = vector.shape_cast %115 : vector<1x8x128xf32> to vector<8x128xf32>
    %117 = vector.shape_cast %114 : vector<8x128xf32> to vector<1x8x128xf32>
    tpu.vector_store %arg5[%c3_35, %c0_36, %c0_37], %117 {strides = array<i32>} : memref<8x8x128xf32, #tpu.memory_space<vmem>>, vector<1x8x128xf32>,
    %c4 = arith.constant 4 : index
    %c0_38 = arith.constant 0 : index
    %c0_39 = arith.constant 0 : index
    %118 = vector.load %arg2[%c4, %c0_38, %c0_39] : memref<8x8x384xf32, #tpu.memory_space<vmem>>, vector<1x8x384xf32>
    %119 = vector.shape_cast %118 : vector<1x8x384xf32> to vector<8x384xf32>
    %cst_40 = arith.constant dense<0.000000e+00> : vector<8x384xf32>
    %120 = tpu.matmul %114, %3, %cst_40 {dimension_numbers = #tpu.dot_dimension_numbers<[1], [0], [0], [1], [0, 0, 1, 1], [], []>} : vector<8x128xf32>, vector<128x384xf32>, vector<8x384xf32> -> vector<8x384xf32>
    %121 = vector.extract_strided_slice %119 {offsets = [0, 0], sizes = [8, 256], strides = [1, 1]} : vector<8x384xf32> to vector<8x256xf32>
    %122 = vector.extract_strided_slice %120 {offsets = [0, 0], sizes = [8, 256], strides = [1, 1]} : vector<8x384xf32> to vector<8x256xf32>
    %123 = arith.addf %121, %122 : vector<8x256xf32>
    %124 = arith.negf %123 : vector<8x256xf32>
    %125 = math.exp %124 : vector<8x256xf32>
    %cst_41 = arith.constant 1.000000e+00 : f32
    %126 = vector.broadcast %cst_41 : f32 to vector<8x256xf32>
    %127 = arith.addf %126, %125 : vector<8x256xf32>
    %128 = arith.divf %126, %127 : vector<8x256xf32>
    %129 = vector.extract_strided_slice %128 {offsets = [0, 0], sizes = [8, 128], strides = [1, 1]} : vector<8x256xf32> to vector<8x128xf32>
    %130 = vector.extract_strided_slice %128 {offsets = [0, 128], sizes = [8, 128], strides = [1, 1]} : vector<8x256xf32> to vector<8x128xf32>
    %131 = vector.extract_strided_slice %119 {offsets = [0, 256], sizes = [8, 128], strides = [1, 1]} : vector<8x384xf32> to vector<8x128xf32>
    %132 = vector.extract_strided_slice %120 {offsets = [0, 256], sizes = [8, 128], strides = [1, 1]} : vector<8x384xf32> to vector<8x128xf32>
    %133 = vector.broadcast %4 : vector<1x128xf32> to vector<8x128xf32>
    %134 = arith.addf %132, %133 : vector<8x128xf32>
    %135 = arith.mulf %129, %134 : vector<8x128xf32>
    %136 = arith.addf %131, %135 : vector<8x128xf32>
    %137 = math.tanh %136 : vector<8x128xf32>
    %cst_42 = arith.constant 1.000000e+00 : f32
    %138 = vector.broadcast %cst_42 : f32 to vector<8x128xf32>
    %139 = arith.subf %138, %130 : vector<8x128xf32>
    %140 = arith.mulf %139, %137 : vector<8x128xf32>
    %141 = arith.mulf %130, %114 : vector<8x128xf32>
    %142 = arith.addf %140, %141 : vector<8x128xf32>
    %c4_43 = arith.constant 4 : index
    %c0_44 = arith.constant 0 : index
    %c0_45 = arith.constant 0 : index
    %143 = vector.load %arg5[%c4_43, %c0_44, %c0_45] : memref<8x8x128xf32, #tpu.memory_space<vmem>>, vector<1x8x128xf32>
    %144 = vector.shape_cast %143 : vector<1x8x128xf32> to vector<8x128xf32>
    %145 = vector.shape_cast %142 : vector<8x128xf32> to vector<1x8x128xf32>
    tpu.vector_store %arg5[%c4_43, %c0_44, %c0_45], %145 {strides = array<i32>} : memref<8x8x128xf32, #tpu.memory_space<vmem>>, vector<1x8x128xf32>,
    %c5 = arith.constant 5 : index
    %c0_46 = arith.constant 0 : index
    %c0_47 = arith.constant 0 : index
    %146 = vector.load %arg2[%c5, %c0_46, %c0_47] : memref<8x8x384xf32, #tpu.memory_space<vmem>>, vector<1x8x384xf32>
    %147 = vector.shape_cast %146 : vector<1x8x384xf32> to vector<8x384xf32>
    %cst_48 = arith.constant dense<0.000000e+00> : vector<8x384xf32>
    %148 = tpu.matmul %142, %3, %cst_48 {dimension_numbers = #tpu.dot_dimension_numbers<[1], [0], [0], [1], [0, 0, 1, 1], [], []>} : vector<8x128xf32>, vector<128x384xf32>, vector<8x384xf32> -> vector<8x384xf32>
    %149 = vector.extract_strided_slice %147 {offsets = [0, 0], sizes = [8, 256], strides = [1, 1]} : vector<8x384xf32> to vector<8x256xf32>
    %150 = vector.extract_strided_slice %148 {offsets = [0, 0], sizes = [8, 256], strides = [1, 1]} : vector<8x384xf32> to vector<8x256xf32>
    %151 = arith.addf %149, %150 : vector<8x256xf32>
    %152 = arith.negf %151 : vector<8x256xf32>
    %153 = math.exp %152 : vector<8x256xf32>
    %cst_49 = arith.constant 1.000000e+00 : f32
    %154 = vector.broadcast %cst_49 : f32 to vector<8x256xf32>
    %155 = arith.addf %154, %153 : vector<8x256xf32>
    %156 = arith.divf %154, %155 : vector<8x256xf32>
    %157 = vector.extract_strided_slice %156 {offsets = [0, 0], sizes = [8, 128], strides = [1, 1]} : vector<8x256xf32> to vector<8x128xf32>
    %158 = vector.extract_strided_slice %156 {offsets = [0, 128], sizes = [8, 128], strides = [1, 1]} : vector<8x256xf32> to vector<8x128xf32>
    %159 = vector.extract_strided_slice %147 {offsets = [0, 256], sizes = [8, 128], strides = [1, 1]} : vector<8x384xf32> to vector<8x128xf32>
    %160 = vector.extract_strided_slice %148 {offsets = [0, 256], sizes = [8, 128], strides = [1, 1]} : vector<8x384xf32> to vector<8x128xf32>
    %161 = vector.broadcast %4 : vector<1x128xf32> to vector<8x128xf32>
    %162 = arith.addf %160, %161 : vector<8x128xf32>
    %163 = arith.mulf %157, %162 : vector<8x128xf32>
    %164 = arith.addf %159, %163 : vector<8x128xf32>
    %165 = math.tanh %164 : vector<8x128xf32>
    %cst_50 = arith.constant 1.000000e+00 : f32
    %166 = vector.broadcast %cst_50 : f32 to vector<8x128xf32>
    %167 = arith.subf %166, %158 : vector<8x128xf32>
    %168 = arith.mulf %167, %165 : vector<8x128xf32>
    %169 = arith.mulf %158, %142 : vector<8x128xf32>
    %170 = arith.addf %168, %169 : vector<8x128xf32>
    %c5_51 = arith.constant 5 : index
    %c0_52 = arith.constant 0 : index
    %c0_53 = arith.constant 0 : index
    %171 = vector.load %arg5[%c5_51, %c0_52, %c0_53] : memref<8x8x128xf32, #tpu.memory_space<vmem>>, vector<1x8x128xf32>
    %172 = vector.shape_cast %171 : vector<1x8x128xf32> to vector<8x128xf32>
    %173 = vector.shape_cast %170 : vector<8x128xf32> to vector<1x8x128xf32>
    tpu.vector_store %arg5[%c5_51, %c0_52, %c0_53], %173 {strides = array<i32>} : memref<8x8x128xf32, #tpu.memory_space<vmem>>, vector<1x8x128xf32>,
    %c6 = arith.constant 6 : index
    %c0_54 = arith.constant 0 : index
    %c0_55 = arith.constant 0 : index
    %174 = vector.load %arg2[%c6, %c0_54, %c0_55] : memref<8x8x384xf32, #tpu.memory_space<vmem>>, vector<1x8x384xf32>
    %175 = vector.shape_cast %174 : vector<1x8x384xf32> to vector<8x384xf32>
    %cst_56 = arith.constant dense<0.000000e+00> : vector<8x384xf32>
    %176 = tpu.matmul %170, %3, %cst_56 {dimension_numbers = #tpu.dot_dimension_numbers<[1], [0], [0], [1], [0, 0, 1, 1], [], []>} : vector<8x128xf32>, vector<128x384xf32>, vector<8x384xf32> -> vector<8x384xf32>
    %177 = vector.extract_strided_slice %175 {offsets = [0, 0], sizes = [8, 256], strides = [1, 1]} : vector<8x384xf32> to vector<8x256xf32>
    %178 = vector.extract_strided_slice %176 {offsets = [0, 0], sizes = [8, 256], strides = [1, 1]} : vector<8x384xf32> to vector<8x256xf32>
    %179 = arith.addf %177, %178 : vector<8x256xf32>
    %180 = arith.negf %179 : vector<8x256xf32>
    %181 = math.exp %180 : vector<8x256xf32>
    %cst_57 = arith.constant 1.000000e+00 : f32
    %182 = vector.broadcast %cst_57 : f32 to vector<8x256xf32>
    %183 = arith.addf %182, %181 : vector<8x256xf32>
    %184 = arith.divf %182, %183 : vector<8x256xf32>
    %185 = vector.extract_strided_slice %184 {offsets = [0, 0], sizes = [8, 128], strides = [1, 1]} : vector<8x256xf32> to vector<8x128xf32>
    %186 = vector.extract_strided_slice %184 {offsets = [0, 128], sizes = [8, 128], strides = [1, 1]} : vector<8x256xf32> to vector<8x128xf32>
    %187 = vector.extract_strided_slice %175 {offsets = [0, 256], sizes = [8, 128], strides = [1, 1]} : vector<8x384xf32> to vector<8x128xf32>
    %188 = vector.extract_strided_slice %176 {offsets = [0, 256], sizes = [8, 128], strides = [1, 1]} : vector<8x384xf32> to vector<8x128xf32>
    %189 = vector.broadcast %4 : vector<1x128xf32> to vector<8x128xf32>
    %190 = arith.addf %188, %189 : vector<8x128xf32>
    %191 = arith.mulf %185, %190 : vector<8x128xf32>
    %192 = arith.addf %187, %191 : vector<8x128xf32>
    %193 = math.tanh %192 : vector<8x128xf32>
    %cst_58 = arith.constant 1.000000e+00 : f32
    %194 = vector.broadcast %cst_58 : f32 to vector<8x128xf32>
    %195 = arith.subf %194, %186 : vector<8x128xf32>
    %196 = arith.mulf %195, %193 : vector<8x128xf32>
    %197 = arith.mulf %186, %170 : vector<8x128xf32>
    %198 = arith.addf %196, %197 : vector<8x128xf32>
    %c6_59 = arith.constant 6 : index
    %c0_60 = arith.constant 0 : index
    %c0_61 = arith.constant 0 : index
    %199 = vector.load %arg5[%c6_59, %c0_60, %c0_61] : memref<8x8x128xf32, #tpu.memory_space<vmem>>, vector<1x8x128xf32>
    %200 = vector.shape_cast %199 : vector<1x8x128xf32> to vector<8x128xf32>
    %201 = vector.shape_cast %198 : vector<8x128xf32> to vector<1x8x128xf32>
    tpu.vector_store %arg5[%c6_59, %c0_60, %c0_61], %201 {strides = array<i32>} : memref<8x8x128xf32, #tpu.memory_space<vmem>>, vector<1x8x128xf32>,
    %c7 = arith.constant 7 : index
    %c0_62 = arith.constant 0 : index
    %c0_63 = arith.constant 0 : index
    %202 = vector.load %arg2[%c7, %c0_62, %c0_63] : memref<8x8x384xf32, #tpu.memory_space<vmem>>, vector<1x8x384xf32>
    %203 = vector.shape_cast %202 : vector<1x8x384xf32> to vector<8x384xf32>
    %cst_64 = arith.constant dense<0.000000e+00> : vector<8x384xf32>
    %204 = tpu.matmul %198, %3, %cst_64 {dimension_numbers = #tpu.dot_dimension_numbers<[1], [0], [0], [1], [0, 0, 1, 1], [], []>} : vector<8x128xf32>, vector<128x384xf32>, vector<8x384xf32> -> vector<8x384xf32>
    %205 = vector.extract_strided_slice %203 {offsets = [0, 0], sizes = [8, 256], strides = [1, 1]} : vector<8x384xf32> to vector<8x256xf32>
    %206 = vector.extract_strided_slice %204 {offsets = [0, 0], sizes = [8, 256], strides = [1, 1]} : vector<8x384xf32> to vector<8x256xf32>
    %207 = arith.addf %205, %206 : vector<8x256xf32>
    %208 = arith.negf %207 : vector<8x256xf32>
    %209 = math.exp %208 : vector<8x256xf32>
    %cst_65 = arith.constant 1.000000e+00 : f32
    %210 = vector.broadcast %cst_65 : f32 to vector<8x256xf32>
    %211 = arith.addf %210, %209 : vector<8x256xf32>
    %212 = arith.divf %210, %211 : vector<8x256xf32>
    %213 = vector.extract_strided_slice %212 {offsets = [0, 0], sizes = [8, 128], strides = [1, 1]} : vector<8x256xf32> to vector<8x128xf32>
    %214 = vector.extract_strided_slice %212 {offsets = [0, 128], sizes = [8, 128], strides = [1, 1]} : vector<8x256xf32> to vector<8x128xf32>
    %215 = vector.extract_strided_slice %203 {offsets = [0, 256], sizes = [8, 128], strides = [1, 1]} : vector<8x384xf32> to vector<8x128xf32>
    %216 = vector.extract_strided_slice %204 {offsets = [0, 256], sizes = [8, 128], strides = [1, 1]} : vector<8x384xf32> to vector<8x128xf32>
    %217 = vector.broadcast %4 : vector<1x128xf32> to vector<8x128xf32>
    %218 = arith.addf %216, %217 : vector<8x128xf32>
    %219 = arith.mulf %213, %218 : vector<8x128xf32>
    %220 = arith.addf %215, %219 : vector<8x128xf32>
    %221 = math.tanh %220 : vector<8x128xf32>
    %cst_66 = arith.constant 1.000000e+00 : f32
    %222 = vector.broadcast %cst_66 : f32 to vector<8x128xf32>
    %223 = arith.subf %222, %214 : vector<8x128xf32>
    %224 = arith.mulf %223, %221 : vector<8x128xf32>
    %225 = arith.mulf %214, %198 : vector<8x128xf32>
    %226 = arith.addf %224, %225 : vector<8x128xf32>
    %c7_67 = arith.constant 7 : index
    %c0_68 = arith.constant 0 : index
    %c0_69 = arith.constant 0 : index
    %227 = vector.load %arg5[%c7_67, %c0_68, %c0_69] : memref<8x8x128xf32, #tpu.memory_space<vmem>>, vector<1x8x128xf32>
    %228 = vector.shape_cast %227 : vector<1x8x128xf32> to vector<8x128xf32>
    %229 = vector.shape_cast %226 : vector<8x128xf32> to vector<1x8x128xf32>
    tpu.vector_store %arg5[%c7_67, %c0_68, %c0_69], %229 {strides = array<i32>} : memref<8x8x128xf32, #tpu.memory_space<vmem>>, vector<1x8x128xf32>,
    %c0_70 = arith.constant 0 : index
    %c0_71 = arith.constant 0 : index
    %230 = vector.load %arg8[%c0_70, %c0_71] : memref<8x128xf32, #tpu.memory_space<vmem>>, vector<8x128xf32>
    tpu.vector_store %arg8[%c0_70, %c0_71], %226 {strides = array<i32>} : memref<8x128xf32, #tpu.memory_space<vmem>>, vector<8x128xf32>,
    return
  }
  func.func @transform_0(%arg0: i32, %arg1: i32) -> (i32, i32, i32) {
    %c0_i32 = arith.constant 0 : i32
    %c0_i32_0 = arith.constant 0 : i32
    return %arg1, %arg0, %c0_i32 : i32, i32, i32
  }
  func.func @transform_2(%arg0: i32, %arg1: i32) -> (i32, i32) {
    %c0_i32 = arith.constant 0 : i32
    %c0_i32_0 = arith.constant 0 : i32
    %c0_i32_1 = arith.constant 0 : i32
    return %c0_i32, %c0_i32_0 : i32, i32
  }
  func.func @transform_3(%arg0: i32, %arg1: i32) -> (i32, i32, i32) {
    %c0_i32 = arith.constant 0 : i32
    %c0_i32_0 = arith.constant 0 : i32
    return %arg1, %arg0, %c0_i32 : i32, i32, i32
  }
}

</mosaic_0001>

<bundles_post_ra>
// kernel: tpu_custom_call.1
= control target key start
LH: loop header
LB: loop body
LE: loop exit
PB: predicated region body
PF: predicated region fallthrough
CT: control target
= control target key end

     0   :  { %8 = vsyncpa [#allocation6], 0  ;;  %s2933_s0 = inlined_call_operand.hbm [shape: f32[8,8,384], index: 0, kind: input, shape index: {}]   ;;  %s2934_s1 = inlined_call_operand.hbm [shape: f32[128,384], index: 1, kind: input, shape index: {}]   ;;  %s2935_s2 = inlined_call_operand.vmem [shape: f32[1,128], index: 2, kind: input, shape index: {}]   ;;  %s2936_s3 = inlined_call_operand.hbm [shape: f32[8,8,128], index: 3, kind: output, shape index: {}]  }
   0x1   :  { %9 = vsyncpa [#allocation7], 0  ;;  %s2115_s12 = smov [#allocation5]  }
   0x2   :  { %s15_s13 = sshll.u32 %s2115_s12, 4  ;;  %s16_s13 = int_to_ptr.vmem [resolvable:$true] %s15_s13 }
   0x3   :  { %s2057_s14 = scalar_lea.vmem %s16_s13, 3072  ;;  %p2062_p1 = scmp.lt.s32.totalorder %s16_s13, %s16_s13 }
   0x4   :  { %p2058_p0 = scmp.ne.s32.totalorder %s16_s13, %s2057_s14  ;;  %p2063_p2 = scmp.lt.s32.totalorder %s2057_s14, %s2057_s14 }
   0x6   :  { %p2064_p3 = por %p2063_p2, %p2062_p1 }
   0x8   :  { %p2065_p4 = pnand %p2064_p3, %p2058_p0 }
   0xa   :  { %2068 = shalt.err (!%p2065_p4)
}
   0xb   :  { %s2116_s15 = smov 384   ;;  %s2117_s16 = smov 24  }
   0xc   :  { %21 = dma.hbm_to_vmem [thread:$0]  %s2933_s0, 3072, %s16_s13, [#allocation6], %s2116_s15, %s2116_s15, %s2117_s16  }
   0xd   :  { %2109 = dma.done.wait [#allocation6], 3072  }
   0xe   :  { %2110 = vsyncadd [#allocation6], 4294964224  ;;  %s2118_s19 = smov [#allocation2]  }
   0xf   :  { %s38_s20 = sshll.u32 %s2118_s19, 4  ;;  %s39_s20 = int_to_ptr.vmem [resolvable:$true] %s38_s20 }
  0x10   :  { %s2077_s21 = scalar_lea.vmem %s39_s20, 6144  ;;  %p2082_p6 = scmp.lt.s32.totalorder %s39_s20, %s39_s20 }
  0x11   :  { %p2078_p5 = scmp.ne.s32.totalorder %s39_s20, %s2077_s21  ;;  %p2083_p7 = scmp.lt.s32.totalorder %s2077_s21, %s2077_s21 }
  0x13   :  { %p2084_p8 = por %p2083_p7, %p2082_p6 }
  0x15   :  { %p2085_p9 = pnand %p2084_p8, %p2078_p5 }
  0x17   :  { %2088 = shalt.err (!%p2085_p9)  }
  0x18   :  { %41 = dma.hbm_to_vmem [thread:$0]  %s2934_s1, 6144, %s39_s20, [#allocation3] }
  0x19   :  { %2111 = dma.done.wait [#allocation3], 6144 }
  0x1a   :  { %2112 = vsyncadd [#allocation3], 4294961152  ;;  %v2941_v0 = vmov 0.0   ;;  %vm2120_vm0 = vmmov 0   ;;  %v2154_v1 = vld [vmem:[#allocation2 + $0x170] sm:$0xff]  ;;  %v2156_v2 = vld [vmem:[#allocation2 + $0x168] sm:$0xff] }
  0x1b   :  { %1631 = vmatprep.subr.mxu1 %v2941_v0  ;;  %164 = vmatprep.mubr.f32.mxu0 %v2941_v0  ;;  %2953 = vst [vmem:[#allocation16_spill] sm:$0xff] %v2154_v1  ;;  %v2158_v3 = vld [vmem:[#allocation2 + $0x158] sm:$0xff]  ;;  %v2161_v4 = vld [vmem:[#allocation2 + $0x150] sm:$0xff]  ;;  %v2164_v5 = vld [vmem:[#allocation2 + $0x140] sm:$0xff] }
  0x1c   :  { %1663 = vmatprep.mubr.msk.f32.mxu1 %vm2120_vm0, %v2941_v0  ;;  %100 = vmatprep.subr.mxu0 %v2154_v1  ;;  %v2167_v6 = vld [vmem:[#allocation2 + $0x138] sm:$0xff]  ;;  %v2170_v7 = vld [vmem:[#allocation2 + $0x128] sm:$0xff]  ;;  %v2173_v8 = vld [vmem:[#allocation2 + $0x120] sm:$0xff] }
  0x1d   :  { %101 = vmatpush1.msra.mxu0 %v2156_v2  ;;  %v2176_v9 = vld [vmem:[#allocation2 + $0x110] sm:$0xff]  ;;  %v2179_v10 = vld [vmem:[#allocation2 + $0x108] sm:$0xff]  ;;  %v2182_v11 = vld [vmem:[#allocation2 + $0xf8] sm:$0xff] }
  0x1e   :  { %102 = vmatprep.subr.mxu0 %v2158_v3  ;;  %v2185_v12 = vld [vmem:[#allocation2 + $0xf0] sm:$0xff]  ;;  %v2188_v13 = vld [vmem:[#allocation2 + $0xe0] sm:$0xff]  ;;  %v2190_v14 = vld [vmem:[#allocation2 + $0x178] sm:$0xff] }
  0x1f   :  { %103 = vmatpush1.msra.mxu0 %v2161_v4  ;;  %v2193_v15 = vld [vmem:[#allocation2 + $0xd8] sm:$0xff]  ;;  %1632 = vmatpush3.msra.mxu1 %v2190_v14  ;;  %v2196_v16 = vld [vmem:[#allocation2 + $0x160] sm:$0xff]  ;;  %v2199_v17 = vld [vmem:[#allocation2 + $0xc8] sm:$0xff] }
  0x20   :  { %104 = vmatprep.subr.mxu0 %v2164_v5  ;;  %1633 = vmatprep.subr.mxu1 %v2941_v0  ;;  %v2202_v18 = vld [vmem:[#allocation2 + $0x148] sm:$0xff]  ;;  %v2205_v19 = vld [vmem:[#allocation2 + $0xc0] sm:$0xff]  ;;  %v2209_v20 = vld [vmem:[#allocation2 + $0xb0] sm:$0xff] }
  0x21   :  { %105 = vmatpush1.msra.mxu0 %v2167_v6  ;;  %1634 = vmatpush3.msra.mxu1 %v2196_v16  ;;  %v2212_v21 = vld [vmem:[#allocation2 + $0x130] sm:$0xff]  ;;  %v2215_v22 = vld [vmem:[#allocation2 + $0xa8] sm:$0xff]  ;;  %v2219_v23 = vld [vmem:[#allocation2 + $0x98] sm:$0xff] }
  0x22   :  { %106 = vmatprep.subr.mxu0 %v2170_v7  ;;  %1635 = vmatprep.subr.mxu1 %v2941_v0  ;;  %v2222_v24 = vld [vmem:[#allocation2 + $0x118] sm:$0xff]  ;;  %v2225_v25 = vld [vmem:[#allocation2 + $0x90] sm:$0xff]  ;;  %v2229_v26 = vld [vmem:[#allocation2 + $0x80] sm:$0xff] }
  0x23   :  { %107 = vmatpush1.msra.mxu0 %v2173_v8  ;;  %1636 = vmatpush3.msra.mxu1 %v2202_v18  ;;  %v2232_v27 = vld [vmem:[#allocation2 + $0x100] sm:$0xff]  ;;  %v2235_v28 = vld [vmem:[#allocation2 + $0x78] sm:$0xff]  ;;  %v2239_v29 = vld [vmem:[#allocation2 + $0x68] sm:$0xff] }
  0x24   :  { %108 = vmatprep.subr.mxu0 %v2176_v9  ;;  %1637 = vmatprep.subr.mxu1 %v2941_v0  ;;  %v2242_v30 = vld [vmem:[#allocation2 + $0xe8] sm:$0xff]  ;;  %v2245_v31 = vld [vmem:[#allocation2 + $0x60] sm:$0xff]  ;;  %v2249_v32 = vld [vmem:[#allocation2 + $0x50] sm:$0xff] }
  0x25   :  { %109 = vmatpush1.msra.mxu0 %v2179_v10  ;;  %1638 = vmatpush3.msra.mxu1 %v2212_v21  ;;  %v2252_v33 = vld [vmem:[#allocation2 + $0xd0] sm:$0xff]  ;;  %v2255_v34 = vld [vmem:[#allocation2 + $0x48] sm:$0xff]  ;;  %v2259_v35 = vld [vmem:[#allocation2 + $0x38] sm:$0xff] }
  0x26   :  { %110 = vmatprep.subr.mxu0 %v2182_v11  ;;  %1639 = vmatprep.subr.mxu1 %v2941_v0  ;;  %v2262_v36 = vld [vmem:[#allocation2 + $0xb8] sm:$0xff]  ;;  %v2265_v37 = vld [vmem:[#allocation2 + $0x30] sm:$0xff]  ;;  %v2269_v38 = vld [vmem:[#allocation2 + $0x20] sm:$0xff] }
  0x27   :  { %111 = vmatpush1.msra.mxu0 %v2185_v12  ;;  %1640 = vmatpush3.msra.mxu1 %v2222_v24  ;;  %v2272_v39 = vld [vmem:[#allocation2 + $0xa0] sm:$0xff]  ;;  %v2275_v40 = vld [vmem:[#allocation2 + $0x18] sm:$0xff]  ;;  %v2279_v41 = vld [vmem:[#allocation2 + $0x8] sm:$0xff] }
  0x28   :  { %112 = vmatprep.subr.mxu0 %v2188_v13  ;;  %1641 = vmatprep.subr.mxu1 %v2941_v0  ;;  %2954 = vst [vmem:[#allocation17_spill] sm:$0xff] %v2279_v41  ;;  %v2282_v42 = vld [vmem:[#allocation2 + $0x88] sm:$0xff]  ;;  %v2285_v43 = vld [vmem:[#allocation2] sm:$0xff]  ;;  %v2290_v44 = vld [vmem:[#allocation2 + $0x70] sm:$0xff] }
  0x29   :  { %113 = vmatpush1.msra.mxu0 %v2193_v15  ;;  %1642 = vmatpush3.msra.mxu1 %v2232_v27  ;;  %2955 = vst [vmem:[#allocation18_spill] sm:$0xff] %v2285_v43  ;;  %v2296_v45 = vld [vmem:[#allocation2 + $0x58] sm:$0xff]  ;;  %v2301_v46 = vld [vmem:[#allocation2 + $0x40] sm:$0xff]  ;;  %v2307_v47 = vld [vmem:[#allocation2 + $0x28] sm:$0xff] }
  0x2a   :  { %114 = vmatprep.subr.mxu0 %v2199_v17  ;;  %1643 = vmatprep.subr.mxu1 %v2941_v0  ;;  %2956 = vst [vmem:[#allocation19_spill] sm:$0xff] %v2307_v47  ;;  %v2313_v48 = vld [vmem:[#allocation2 + $0x10] sm:$0xff]  ;;  %v97_v49 = vld [vmem:[#allocation5] sm:$0xff]  ;;  %v98_v53 = vld [vmem:[#allocation5 + $0x8] sm:$0xff] }
  0x2b   :  { %115 = vmatpush1.msra.mxu0 %v2205_v19  ;;  %1644 = vmatpush3.msra.mxu1 %v2242_v30  ;;  %2957 = vst [vmem:[#allocation20_spill] sm:$0xff] %v2313_v48  ;;  %v2387_v62 = vld [vmem:[%s2935_s2] ss:$0 sm:$0xff] }
  0x2c   :  { %116 = vmatprep.subr.mxu0 %v2209_v20  ;;  %1645 = vmatprep.subr.mxu1 %v2941_v0 }
  0x2d   :  { %117 = vmatpush1.msra.mxu0 %v2215_v22  ;;  %1646 = vmatpush3.msra.mxu1 %v2252_v33 }
  0x2e   :  { %118 = vmatprep.subr.mxu0 %v2219_v23  ;;  %1647 = vmatprep.subr.mxu1 %v2941_v0 }
  0x2f   :  { %119 = vmatpush1.msra.mxu0 %v2225_v25  ;;  %1648 = vmatpush3.msra.mxu1 %v2262_v36 }
  0x30   :  { %120 = vmatprep.subr.mxu0 %v2229_v26  ;;  %1649 = vmatprep.subr.mxu1 %v2941_v0 }
  0x31   :  { %121 = vmatpush1.msra.mxu0 %v2235_v28  ;;  %1650 = vmatpush3.msra.mxu1 %v2272_v39 }
  0x32   :  { %122 = vmatprep.subr.mxu0 %v2239_v29  ;;  %1651 = vmatprep.subr.mxu1 %v2941_v0 }
  0x33   :  { %123 = vmatpush1.msra.mxu0 %v2245_v31  ;;  %1652 = vmatpush3.msra.mxu1 %v2282_v42 }
  0x34   :  { %124 = vmatprep.subr.mxu0 %v2249_v32  ;;  %1653 = vmatprep.subr.mxu1 %v2941_v0 }
  0x35   :  { %125 = vmatpush1.msra.mxu0 %v2255_v34  ;;  %1654 = vmatpush3.msra.mxu1 %v2290_v44 }
  0x36   :  { %126 = vmatprep.subr.mxu0 %v2259_v35  ;;  %1655 = vmatprep.subr.mxu1 %v2941_v0 }
  0x37   :  { %127 = vmatpush1.msra.mxu0 %v2265_v37  ;;  %1656 = vmatpush3.msra.mxu1 %v2296_v45 }
  0x38   :  { %128 = vmatprep.subr.mxu0 %v2269_v38  ;;  %1657 = vmatprep.subr.mxu1 %v2941_v0 }
  0x39   :  { %129 = vmatpush1.msra.mxu0 %v2275_v40  ;;  %1658 = vmatpush3.msra.mxu1 %v2301_v46 }
  0x3a   :  { %130 = vmatprep.subr.mxu0 %v2279_v41  ;;  %1659 = vmatprep.subr.mxu1 %v2941_v0 }
  0x3b   :  { %131 = vmatpush1.msra.mxu0 %v2285_v43  ;;  %1660 = vmatpush3.msra.mxu1 %v2307_v47 }
  0x3c   :  { %165 = vmatmul.mubr.f32.vlgmr.msra.gmra.mxu0 %v2941_v0  ;;  %274 = vmatprep.subr.mxu0 %v2154_v1 }
  0x3d   :  { %275 = vmatpush1.msra.mxu0 %v2156_v2  ;;  %1661 = vmatprep.subr.mxu1 %v2941_v0 }
  0x3e   :  { %276 = vmatprep.subr.mxu0 %v2158_v3  ;;  %1662 = vmatpush3.msra.mxu1 %v2313_v48 }
  0x3f   :  { %277 = vmatpush1.msra.mxu0 %v2161_v4  ;;  %1664 = vmatmul.mubr.f32.vlgmr.msra.gmra.mxu1 %v2941_v0 }
  0x40   :  { %278 = vmatprep.subr.mxu0 %v2164_v5  ;;  %1666 = vmatprep.subr.mxu1 %v2941_v0 }
  0x41   :  { %279 = vmatpush1.msra.mxu0 %v2167_v6  ;;  %1667 = vmatpush3.msra.mxu1 %v2190_v14 }
  0x42   :  { %280 = vmatprep.subr.mxu0 %v2170_v7  ;;  %1668 = vmatprep.subr.mxu1 %v2941_v0 }
  0x43   :  { %281 = vmatpush1.msra.mxu0 %v2173_v8  ;;  %1669 = vmatpush3.msra.mxu1 %v2196_v16 }
  0x44   :  { %282 = vmatprep.subr.mxu0 %v2176_v9  ;;  %1670 = vmatprep.subr.mxu1 %v2941_v0 }
  0x45   :  { %283 = vmatpush1.msra.mxu0 %v2179_v10  ;;  %1671 = vmatpush3.msra.mxu1 %v2202_v18 }
  0x46   :  { %284 = vmatprep.subr.mxu0 %v2182_v11  ;;  %1672 = vmatprep.subr.mxu1 %v2941_v0 }
  0x47   :  { %285 = vmatpush1.msra.mxu0 %v2185_v12  ;;  %1673 = vmatpush3.msra.mxu1 %v2212_v21 }
  0x48   :  { %286 = vmatprep.subr.mxu0 %v2188_v13  ;;  %1674 = vmatprep.subr.mxu1 %v2941_v0 }
  0x49   :  { %287 = vmatpush1.msra.mxu0 %v2193_v15  ;;  %1675 = vmatpush3.msra.mxu1 %v2222_v24 }
  0x4a   :  { %288 = vmatprep.subr.mxu0 %v2199_v17  ;;  %1676 = vmatprep.subr.mxu1 %v2941_v0 }
  0x4b   :  { %289 = vmatpush1.msra.mxu0 %v2205_v19  ;;  %1677 = vmatpush3.msra.mxu1 %v2232_v27 }
  0x4c   :  { %290 = vmatprep.subr.mxu0 %v2209_v20  ;;  %1678 = vmatprep.subr.mxu1 %v2941_v0 }
  0x4d   :  { %291 = vmatpush1.msra.mxu0 %v2215_v22  ;;  %1679 = vmatpush3.msra.mxu1 %v2242_v30 }
  0x4e   :  { %292 = vmatprep.subr.mxu0 %v2219_v23  ;;  %1680 = vmatprep.subr.mxu1 %v2941_v0 }
  0x4f   :  { %293 = vmatpush1.msra.mxu0 %v2225_v25  ;;  %1681 = vmatpush3.msra.mxu1 %v2252_v33 }
  0x50   :  { %294 = vmatprep.subr.mxu0 %v2229_v26  ;;  %1682 = vmatprep.subr.mxu1 %v2941_v0 }
  0x51   :  { %295 = vmatpush1.msra.mxu0 %v2235_v28  ;;  %1683 = vmatpush3.msra.mxu1 %v2262_v36 }
  0x52   :  { %296 = vmatprep.subr.mxu0 %v2239_v29  ;;  %1684 = vmatprep.subr.mxu1 %v2941_v0 }
  0x53   :  { %297 = vmatpush1.msra.mxu0 %v2245_v31  ;;  %1685 = vmatpush3.msra.mxu1 %v2272_v39 }
  0x54   :  { %298 = vmatprep.subr.mxu0 %v2249_v32  ;;  %1686 = vmatprep.subr.mxu1 %v2941_v0 }
  0x55   :  { %299 = vmatpush1.msra.mxu0 %v2255_v34  ;;  %1687 = vmatpush3.msra.mxu1 %v2282_v42 }
  0x56   :  { %300 = vmatprep.subr.mxu0 %v2259_v35  ;;  %1688 = vmatprep.subr.mxu1 %v2941_v0 }
  0x57   :  { %301 = vmatpush1.msra.mxu0 %v2265_v37  ;;  %1689 = vmatpush3.msra.mxu1 %v2290_v44 }
  0x58   :  { %302 = vmatprep.subr.mxu0 %v2269_v38  ;;  %1690 = vmatprep.subr.mxu1 %v2941_v0 }
  0x59   :  { %303 = vmatpush1.msra.mxu0 %v2275_v40  ;;  %1691 = vmatpush3.msra.mxu1 %v2296_v45 }
  0x5a   :  { %304 = vmatprep.subr.mxu0 %v2279_v41  ;;  %338 = vmatprep.mubr.f32.mxu0 %v2941_v0 }
  0x5b   :  { %305 = vmatpush1.msra.mxu0 %v2285_v43  ;;  %1692 = vmatprep.subr.mxu1 %v2941_v0 }
  0x5c   :  { %1698 = vmatprep.mubr.msk.f32.mxu1 %vm2120_vm0, %v2941_v0  ;;  %1693 = vmatpush3.msra.mxu1 %v2301_v46 }
  0x5d   :  { %443 = vmatprep.subr.mxu0 %v2154_v1  ;;  %1694 = vmatprep.subr.mxu1 %v2941_v0 }
  0x5e   :  { %1695 = vmatpush3.msra.mxu1 %v2307_v47 }
  0x5f   :  { %1696 = vmatprep.subr.mxu1 %v2941_v0 }
  0x60   :  { %1697 = vmatpush3.msra.mxu1 %v2313_v48 }
  0x61   :  { %1701 = vmatprep.subr.mxu1 %v2941_v0 }
  0xfc   :  { %v166_v50 = vpop.f32.mrf.mxu0 }
  0xfd   :  { %v241_v51 = vadd.f32 %v166_v50, %v97_v49 }
  0xfe   :  { %v168_v54 = vpop.f32.mrf.mxu0 }
  0xff   :  { %v1477_v52 = vmul.f32 -1.442695, %v241_v51  ;;  %v242_v55 = vadd.f32 %v168_v54, %v98_v53  ;;  %v237_v56 = vpop.f32.mrf.mxu1  ;;  %v99_v51 = vld [vmem:[#allocation5 + $0x10] sm:$0xff] }
 0x100   :  { %v261_v49 = vadd.f32 %v2387_v62, %v237_v56  ;;  %v271_v56 = vld [vmem:[#allocation5 + $0x18] sm:$0xff] }
 0x101   :  { %1920 = vpow2.f32 %v1477_v52  ;;  %v1478_v57 = vmul.f32 -1.442695, %v242_v55  ;;  %v1665_v58 = vpop.f32.mrf.mxu1 }
 0x103   :  { %1922 = vpow2.f32 %v1478_v57 }
 0x10e   :  { %v1921_v59 = vpop.eup %1920 }
 0x10f   :  { %v249_v60 = vadd.f32 1.0, %v1921_v59 }
 0x110   :  { %v1923_v61 = vpop.eup %1922 }
 0x111   :  { %1924 = vrcp.f32 %v249_v60  ;;  %v250_v63 = vadd.f32 1.0, %v1923_v61 }
 0x113   :  { %1926 = vrcp.f32 %v250_v63 }
 0x11e   :  { %v1925_v50 = vpop.eup %1924 }
 0x11f   :  { %v262_v52 = vmul.f32 %v1925_v50, %v261_v49 }
 0x120   :  { %v1927_v54 = vpop.eup %1926 }
 0x121   :  { %v263_v53 = vadd.f32 %v262_v52, %v99_v51  ;;  %v265_v55 = vsub.f32 1.0, %v1927_v54  ;;  %v267_v59 = vmul.f32 0.0, %v1927_v54  ;;  %v272_v52 = vld [vmem:[#allocation5 + $0x20] sm:$0xff] }
 0x123   :  { %1928 = vtanh.f32 %v263_v53 }
 0x130   :  { %v1929_v57 = vpop.eup %1928 }
 0x131   :  { %v266_v58 = vmul.f32 %v1929_v57, %v265_v55 }
 0x133   :  { %v2390_v60 = vadd.f32 %v267_v59, %v266_v58 }
 0x135   :  { %269 = vst [vmem:[#allocation8] sm:$0xff] %v2390_v60  ;;  %339 = vmatmul.mubr.f32.vlgmr.msra.gmra.mxu0 %v2390_v60  ;;  %1699 = vmatmul.mubr.f32.vlgmr.msra.gmra.mxu1 %v2390_v60 }
 0x136   :  { %444 = vmatpush1.msra.mxu0 %v2156_v2  ;;  %1702 = vmatpush3.msra.mxu1 %v2190_v14 }
 0x137   :  { %445 = vmatprep.subr.mxu0 %v2158_v3  ;;  %1703 = vmatprep.subr.mxu1 %v2941_v0 }
 0x138   :  { %446 = vmatpush1.msra.mxu0 %v2161_v4  ;;  %1704 = vmatpush3.msra.mxu1 %v2196_v16 }
 0x139   :  { %447 = vmatprep.subr.mxu0 %v2164_v5  ;;  %1705 = vmatprep.subr.mxu1 %v2941_v0 }
 0x13a   :  { %448 = vmatpush1.msra.mxu0 %v2167_v6  ;;  %1706 = vmatpush3.msra.mxu1 %v2202_v18 }
 0x13b   :  { %449 = vmatprep.subr.mxu0 %v2170_v7  ;;  %1707 = vmatprep.subr.mxu1 %v2941_v0 }
 0x13c   :  { %450 = vmatpush1.msra.mxu0 %v2173_v8  ;;  %1708 = vmatpush3.msra.mxu1 %v2212_v21 }
 0x13d   :  { %451 = vmatprep.subr.mxu0 %v2176_v9  ;;  %1709 = vmatprep.subr.mxu1 %v2941_v0 }
 0x13e   :  { %452 = vmatpush1.msra.mxu0 %v2179_v10  ;;  %1710 = vmatpush3.msra.mxu1 %v2222_v24 }
 0x13f   :  { %453 = vmatprep.subr.mxu0 %v2182_v11  ;;  %1711 = vmatprep.subr.mxu1 %v2941_v0 }
 0x140   :  { %454 = vmatpush1.msra.mxu0 %v2185_v12  ;;  %1712 = vmatpush3.msra.mxu1 %v2232_v27 }
 0x141   :  { %455 = vmatprep.subr.mxu0 %v2188_v13  ;;  %1713 = vmatprep.subr.mxu1 %v2941_v0 }
 0x142   :  { %456 = vmatpush1.msra.mxu0 %v2193_v15  ;;  %1714 = vmatpush3.msra.mxu1 %v2242_v30 }
 0x143   :  { %457 = vmatprep.subr.mxu0 %v2199_v17  ;;  %1715 = vmatprep.subr.mxu1 %v2941_v0 }
 0x144   :  { %458 = vmatpush1.msra.mxu0 %v2205_v19  ;;  %1716 = vmatpush3.msra.mxu1 %v2252_v33 }
 0x145   :  { %459 = vmatprep.subr.mxu0 %v2209_v20  ;;  %1717 = vmatprep.subr.mxu1 %v2941_v0 }
 0x146   :  { %460 = vmatpush1.msra.mxu0 %v2215_v22  ;;  %1718 = vmatpush3.msra.mxu1 %v2262_v36 }
 0x147   :  { %461 = vmatprep.subr.mxu0 %v2219_v23  ;;  %1719 = vmatprep.subr.mxu1 %v2941_v0 }
 0x148   :  { %462 = vmatpush1.msra.mxu0 %v2225_v25  ;;  %1720 = vmatpush3.msra.mxu1 %v2272_v39 }
 0x149   :  { %463 = vmatprep.subr.mxu0 %v2229_v26  ;;  %1721 = vmatprep.subr.mxu1 %v2941_v0 }
 0x14a   :  { %464 = vmatpush1.msra.mxu0 %v2235_v28  ;;  %1722 = vmatpush3.msra.mxu1 %v2282_v42 }
 0x14b   :  { %465 = vmatprep.subr.mxu0 %v2239_v29  ;;  %1723 = vmatprep.subr.mxu1 %v2941_v0 }
 0x14c   :  { %466 = vmatpush1.msra.mxu0 %v2245_v31  ;;  %1724 = vmatpush3.msra.mxu1 %v2290_v44 }
 0x14d   :  { %467 = vmatprep.subr.mxu0 %v2249_v32  ;;  %1725 = vmatprep.subr.mxu1 %v2941_v0 }
 0x14e   :  { %468 = vmatpush1.msra.mxu0 %v2255_v34  ;;  %1726 = vmatpush3.msra.mxu1 %v2296_v45 }
 0x14f   :  { %469 = vmatprep.subr.mxu0 %v2259_v35  ;;  %1727 = vmatprep.subr.mxu1 %v2941_v0 }
 0x150   :  { %470 = vmatpush1.msra.mxu0 %v2265_v37  ;;  %1728 = vmatpush3.msra.mxu1 %v2301_v46 }
 0x151   :  { %471 = vmatprep.subr.mxu0 %v2269_v38  ;;  %1729 = vmatprep.subr.mxu1 %v2941_v0 }
 0x152   :  { %472 = vmatpush1.msra.mxu0 %v2275_v40  ;;  %1730 = vmatpush3.msra.mxu1 %v2307_v47 }
 0x153   :  { %473 = vmatprep.subr.mxu0 %v2279_v41  ;;  %1731 = vmatprep.subr.mxu1 %v2941_v0 }
 0x154   :  { %474 = vmatpush1.msra.mxu0 %v2285_v43  ;;  %507 = vmatprep.mubr.f32.mxu0 %v2941_v0  ;;  %v273_v43 = vld [vmem:[#allocation5 + $0x28] sm:$0xff] }
 0x155   :  { %1732 = vmatpush3.msra.mxu1 %v2313_v48  ;;  %1733 = vmatprep.mubr.msk.f32.mxu1 %vm2120_vm0, %v2941_v0 }
 0x156   :  { %612 = vmatprep.subr.mxu0 %v2154_v1  ;;  %1736 = vmatprep.subr.mxu1 %v2941_v0 }
 0x1f5   :  { %v340_v61 = vpop.f32.mrf.mxu0  ;;  %v411_v63 = vpop.f32.mrf.mxu1 }
 0x1f6   :  { %v415_v49 = vadd.f32 %v340_v61, %v271_v56  ;;  %v429_v1 = vadd.f32 %v2387_v62, %v411_v63 }
 0x1f7   :  { %v1700_v50 = vpop.f32.mrf.mxu1  ;;  %v342_v53 = vpop.f32.mrf.mxu0 }
 0x1f8   :  { %v1480_v51 = vmul.f32 -1.442695, %v415_v49  ;;  %v416_v54 = vadd.f32 %v342_v53, %v272_v52 }
 0x1fa   :  { %1930 = vpow2.f32 %v1480_v51  ;;  %v1481_v55 = vmul.f32 -1.442695, %v416_v54 }
 0x1fc   :  { %1932 = vpow2.f32 %v1481_v55 }
 0x207   :  { %v1931_v57 = vpop.eup %1930 }
 0x208   :  { %v423_v58 = vadd.f32 1.0, %v1931_v57 }
 0x209   :  { %v1933_v59 = vpop.eup %1932 }
 0x20a   :  { %1934 = vrcp.f32 %v423_v58  ;;  %v424_v48 = vadd.f32 1.0, %v1933_v59  ;;  %v441_v59 = vld [vmem:[#allocation5 + $0x38] sm:$0xff] }
 0x20c   :  { %1936 = vrcp.f32 %v424_v48  ;;  %v2962_v48 = vld [vmem:[#allocation16_spill] sm:$0xff] }
 0x217   :  { %v1935_v0 = vpop.eup %1934 }
 0x218   :  { %v430_v41 = vmul.f32 %v1935_v0, %v429_v1  ;;  %v2958_v0 = vmov 0.0   ;;  %v2959_v1 = vld [vmem:[#allocation17_spill] sm:$0xff] }
 0x219   :  { %v1937_v61 = vpop.eup %1936 }
 0x21a   :  { %v431_v56 = vadd.f32 %v430_v41, %v273_v43  ;;  %v433_v49 = vsub.f32 1.0, %v1937_v61  ;;  %v435_v52 = vmul.f32 %v1937_v61, %v2390_v60  ;;  %v2960_v41 = vld [vmem:[#allocation18_spill] sm:$0xff]  ;;  %v2961_v43 = vld [vmem:[#allocation20_spill] sm:$0xff] }
 0x21b   :  { %v440_v60 = vld [vmem:[#allocation5 + $0x30] sm:$0xff] }
 0x21c   :  { %1938 = vtanh.f32 %v431_v56 }
 0x229   :  { %v1939_v50 = vpop.eup %1938 }
 0x22a   :  { %v434_v51 = vmul.f32 %v1939_v50, %v433_v49 }
 0x22c   :  { %v2464_v53 = vadd.f32 %v435_v52, %v434_v51 }
 0x22e   :  { %438 = vst [vmem:[#allocation8 + $0x8] sm:$0xff] %v2464_v53  ;;  %508 = vmatmul.mubr.f32.vlgmr.msra.gmra.mxu0 %v2464_v53  ;;  %1734 = vmatmul.mubr.f32.vlgmr.msra.gmra.mxu1 %v2464_v53 }
 0x22f   :  { %613 = vmatpush1.msra.mxu0 %v2156_v2  ;;  %1737 = vmatpush3.msra.mxu1 %v2190_v14 }
 0x230   :  { %614 = vmatprep.subr.mxu0 %v2158_v3  ;;  %1738 = vmatprep.subr.mxu1 %v2958_v0 }
 0x231   :  { %615 = vmatpush1.msra.mxu0 %v2161_v4  ;;  %1739 = vmatpush3.msra.mxu1 %v2196_v16 }
 0x232   :  { %616 = vmatprep.subr.mxu0 %v2164_v5  ;;  %1740 = vmatprep.subr.mxu1 %v2958_v0 }
 0x233   :  { %617 = vmatpush1.msra.mxu0 %v2167_v6  ;;  %1741 = vmatpush3.msra.mxu1 %v2202_v18 }
 0x234   :  { %618 = vmatprep.subr.mxu0 %v2170_v7  ;;  %1742 = vmatprep.subr.mxu1 %v2958_v0 }
 0x235   :  { %619 = vmatpush1.msra.mxu0 %v2173_v8  ;;  %1743 = vmatpush3.msra.mxu1 %v2212_v21 }
 0x236   :  { %620 = vmatprep.subr.mxu0 %v2176_v9  ;;  %1744 = vmatprep.subr.mxu1 %v2958_v0 }
 0x237   :  { %621 = vmatpush1.msra.mxu0 %v2179_v10  ;;  %1745 = vmatpush3.msra.mxu1 %v2222_v24 }
 0x238   :  { %622 = vmatprep.subr.mxu0 %v2182_v11  ;;  %1746 = vmatprep.subr.mxu1 %v2958_v0 }
 0x239   :  { %623 = vmatpush1.msra.mxu0 %v2185_v12  ;;  %1747 = vmatpush3.msra.mxu1 %v2232_v27 }
 0x23a   :  { %624 = vmatprep.subr.mxu0 %v2188_v13  ;;  %1748 = vmatprep.subr.mxu1 %v2958_v0 }
 0x23b   :  { %625 = vmatpush1.msra.mxu0 %v2193_v15  ;;  %1749 = vmatpush3.msra.mxu1 %v2242_v30 }
 0x23c   :  { %626 = vmatprep.subr.mxu0 %v2199_v17  ;;  %1750 = vmatprep.subr.mxu1 %v2958_v0 }
 0x23d   :  { %627 = vmatpush1.msra.mxu0 %v2205_v19  ;;  %1751 = vmatpush3.msra.mxu1 %v2252_v33 }
 0x23e   :  { %628 = vmatprep.subr.mxu0 %v2209_v20  ;;  %1752 = vmatprep.subr.mxu1 %v2958_v0 }
 0x23f   :  { %629 = vmatpush1.msra.mxu0 %v2215_v22  ;;  %1753 = vmatpush3.msra.mxu1 %v2262_v36 }
 0x240   :  { %630 = vmatprep.subr.mxu0 %v2219_v23  ;;  %1754 = vmatprep.subr.mxu1 %v2958_v0 }
 0x241   :  { %631 = vmatpush1.msra.mxu0 %v2225_v25  ;;  %1755 = vmatpush3.msra.mxu1 %v2272_v39 }
 0x242   :  { %632 = vmatprep.subr.mxu0 %v2229_v26  ;;  %1756 = vmatprep.subr.mxu1 %v2958_v0 }
 0x243   :  { %633 = vmatpush1.msra.mxu0 %v2235_v28  ;;  %1757 = vmatpush3.msra.mxu1 %v2282_v42 }
 0x244   :  { %634 = vmatprep.subr.mxu0 %v2239_v29  ;;  %1758 = vmatprep.subr.mxu1 %v2958_v0 }
 0x245   :  { %635 = vmatpush1.msra.mxu0 %v2245_v31  ;;  %1759 = vmatpush3.msra.mxu1 %v2290_v44 }
 0x246   :  { %636 = vmatprep.subr.mxu0 %v2249_v32  ;;  %1760 = vmatprep.subr.mxu1 %v2958_v0 }
 0x247   :  { %637 = vmatpush1.msra.mxu0 %v2255_v34  ;;  %1761 = vmatpush3.msra.mxu1 %v2296_v45 }
 0x248   :  { %638 = vmatprep.subr.mxu0 %v2259_v35  ;;  %1762 = vmatprep.subr.mxu1 %v2958_v0 }
 0x249   :  { %639 = vmatpush1.msra.mxu0 %v2265_v37  ;;  %1763 = vmatpush3.msra.mxu1 %v2301_v46 }
 0x24a   :  { %640 = vmatprep.subr.mxu0 %v2269_v38  ;;  %1764 = vmatprep.subr.mxu1 %v2958_v0 }
 0x24b   :  { %641 = vmatpush1.msra.mxu0 %v2275_v40  ;;  %1765 = vmatpush3.msra.mxu1 %v2307_v47 }
 0x24c   :  { %642 = vmatprep.subr.mxu0 %v2959_v1  ;;  %1766 = vmatprep.subr.mxu1 %v2958_v0  ;;  %v442_v1 = vld [vmem:[#allocation5 + $0x40] sm:$0xff] }
 0x24d   :  { %643 = vmatpush1.msra.mxu0 %v2960_v41  ;;  %676 = vmatprep.mubr.f32.mxu0 %v2958_v0 }
 0x24e   :  { %1767 = vmatpush3.msra.mxu1 %v2961_v43  ;;  %1768 = vmatprep.mubr.msk.f32.mxu1 %vm2120_vm0, %v2958_v0 }
 0x24f   :  { %781 = vmatprep.subr.mxu0 %v2962_v48  ;;  %1771 = vmatprep.subr.mxu1 %v2958_v0 }
 0x2ee   :  { %v509_v63 = vpop.f32.mrf.mxu0  ;;  %v580_v54 = vpop.f32.mrf.mxu1 }
 0x2ef   :  { %v584_v55 = vadd.f32 %v509_v63, %v440_v60  ;;  %v598_v48 = vadd.f32 %v2387_v62, %v580_v54 }
 0x2f0   :  { %v1735_v57 = vpop.f32.mrf.mxu1  ;;  %v511_v56 = vpop.f32.mrf.mxu0 }
 0x2f1   :  { %v1482_v58 = vmul.f32 -1.442695, %v584_v55  ;;  %v585_v61 = vadd.f32 %v511_v56, %v441_v59 }
 0x2f3   :  { %1940 = vpow2.f32 %v1482_v58  ;;  %v1483_v49 = vmul.f32 -1.442695, %v585_v61 }
 0x2f5   :  { %1942 = vpow2.f32 %v1483_v49 }
 0x300   :  { %v1941_v50 = vpop.eup %1940 }
 0x301   :  { %v592_v51 = vadd.f32 1.0, %v1941_v50 }
 0x302   :  { %v1943_v52 = vpop.eup %1942 }
 0x303   :  { %1944 = vrcp.f32 %v592_v51  ;;  %v593_v43 = vadd.f32 1.0, %v1943_v52  ;;  %v611_v51 = vld [vmem:[#allocation5 + $0x58] sm:$0xff] }
 0x305   :  { %1946 = vrcp.f32 %v593_v43 }
 0x310   :  { %v1945_v41 = vpop.eup %1944 }
 0x311   :  { %v599_v47 = vmul.f32 %v1945_v41, %v598_v48 }
 0x312   :  { %v1947_v63 = vpop.eup %1946 }
 0x313   :  { %v600_v60 = vadd.f32 %v599_v47, %v442_v1  ;;  %v602_v55 = vsub.f32 1.0, %v1947_v63  ;;  %v604_v59 = vmul.f32 %v1947_v63, %v2464_v53  ;;  %v610_v47 = vld [vmem:[#allocation5 + $0x50] sm:$0xff] }
 0x315   :  { %1948 = vtanh.f32 %v600_v60 }
 0x322   :  { %v1949_v57 = vpop.eup %1948 }
 0x323   :  { %v603_v58 = vmul.f32 %v1949_v57, %v602_v55 }
 0x325   :  { %v2538_v56 = vadd.f32 %v604_v59, %v603_v58 }
 0x327   :  { %607 = vst [vmem:[#allocation8 + $0x10] sm:$0xff] %v2538_v56  ;;  %677 = vmatmul.mubr.f32.vlgmr.msra.gmra.mxu0 %v2538_v56  ;;  %1769 = vmatmul.mubr.f32.vlgmr.msra.gmra.mxu1 %v2538_v56 }
 0x328   :  { %782 = vmatpush1.msra.mxu0 %v2156_v2  ;;  %1772 = vmatpush3.msra.mxu1 %v2190_v14 }
 0x329   :  { %783 = vmatprep.subr.mxu0 %v2158_v3  ;;  %1773 = vmatprep.subr.mxu1 %v2958_v0  ;;  %v2963_v3 = vld [vmem:[#allocation19_spill] sm:$0xff] }
 0x32a   :  { %784 = vmatpush1.msra.mxu0 %v2161_v4  ;;  %1774 = vmatpush3.msra.mxu1 %v2196_v16  ;;  %v2964_v4 = vld [vmem:[#allocation17_spill] sm:$0xff] }
 0x32b   :  { %785 = vmatprep.subr.mxu0 %v2164_v5  ;;  %1775 = vmatprep.subr.mxu1 %v2958_v0  ;;  %v2965_v5 = vld [vmem:[#allocation18_spill] sm:$0xff] }
 0x32c   :  { %786 = vmatpush1.msra.mxu0 %v2167_v6  ;;  %1776 = vmatpush3.msra.mxu1 %v2202_v18  ;;  %v2966_v6 = vld [vmem:[#allocation20_spill] sm:$0xff] }
 0x32d   :  { %787 = vmatprep.subr.mxu0 %v2170_v7  ;;  %1777 = vmatprep.subr.mxu1 %v2958_v0  ;;  %v2967_v7 = vld [vmem:[#allocation16_spill] sm:$0xff] }
 0x32e   :  { %788 = vmatpush1.msra.mxu0 %v2173_v8  ;;  %1778 = vmatpush3.msra.mxu1 %v2212_v21  ;;  %v609_v8 = vld [vmem:[#allocation5 + $0x48] sm:$0xff] }
 0x32f   :  { %789 = vmatprep.subr.mxu0 %v2176_v9  ;;  %1779 = vmatprep.subr.mxu1 %v2958_v0 }
 0x330   :  { %790 = vmatpush1.msra.mxu0 %v2179_v10  ;;  %1780 = vmatpush3.msra.mxu1 %v2222_v24 }
 0x331   :  { %791 = vmatprep.subr.mxu0 %v2182_v11  ;;  %1781 = vmatprep.subr.mxu1 %v2958_v0 }
 0x332   :  { %792 = vmatpush1.msra.mxu0 %v2185_v12  ;;  %1782 = vmatpush3.msra.mxu1 %v2232_v27 }
 0x333   :  { %793 = vmatprep.subr.mxu0 %v2188_v13  ;;  %1783 = vmatprep.subr.mxu1 %v2958_v0 }
 0x334   :  { %794 = vmatpush1.msra.mxu0 %v2193_v15  ;;  %1784 = vmatpush3.msra.mxu1 %v2242_v30 }
 0x335   :  { %795 = vmatprep.subr.mxu0 %v2199_v17  ;;  %1785 = vmatprep.subr.mxu1 %v2958_v0 }
 0x336   :  { %796 = vmatpush1.msra.mxu0 %v2205_v19  ;;  %1786 = vmatpush3.msra.mxu1 %v2252_v33 }
 0x337   :  { %797 = vmatprep.subr.mxu0 %v2209_v20  ;;  %1787 = vmatprep.subr.mxu1 %v2958_v0 }
 0x338   :  { %798 = vmatpush1.msra.mxu0 %v2215_v22  ;;  %1788 = vmatpush3.msra.mxu1 %v2262_v36 }
 0x339   :  { %799 = vmatprep.subr.mxu0 %v2219_v23  ;;  %1789 = vmatprep.subr.mxu1 %v2958_v0 }
 0x33a   :  { %800 = vmatpush1.msra.mxu0 %v2225_v25  ;;  %1790 = vmatpush3.msra.mxu1 %v2272_v39 }
 0x33b   :  { %801 = vmatprep.subr.mxu0 %v2229_v26  ;;  %1791 = vmatprep.subr.mxu1 %v2958_v0 }
 0x33c   :  { %802 = vmatpush1.msra.mxu0 %v2235_v28  ;;  %1792 = vmatpush3.msra.mxu1 %v2282_v42 }
 0x33d   :  { %803 = vmatprep.subr.mxu0 %v2239_v29  ;;  %1793 = vmatprep.subr.mxu1 %v2958_v0 }
 0x33e   :  { %804 = vmatpush1.msra.mxu0 %v2245_v31  ;;  %1794 = vmatpush3.msra.mxu1 %v2290_v44 }
 0x33f   :  { %805 = vmatprep.subr.mxu0 %v2249_v32  ;;  %1795 = vmatprep.subr.mxu1 %v2958_v0 }
 0x340   :  { %806 = vmatpush1.msra.mxu0 %v2255_v34  ;;  %1796 = vmatpush3.msra.mxu1 %v2296_v45 }
 0x341   :  { %807 = vmatprep.subr.mxu0 %v2259_v35  ;;  %1797 = vmatprep.subr.mxu1 %v2958_v0 }
 0x342   :  { %808 = vmatpush1.msra.mxu0 %v2265_v37  ;;  %1798 = vmatpush3.msra.mxu1 %v2301_v46 }
 0x343   :  { %809 = vmatprep.subr.mxu0 %v2269_v38  ;;  %1799 = vmatprep.subr.mxu1 %v2958_v0 }
 0x344   :  { %810 = vmatpush1.msra.mxu0 %v2275_v40  ;;  %1800 = vmatpush3.msra.mxu1 %v2963_v3 }
 0x345   :  { %811 = vmatprep.subr.mxu0 %v2964_v4  ;;  %1801 = vmatprep.subr.mxu1 %v2958_v0 }
 0x346   :  { %812 = vmatpush1.msra.mxu0 %v2965_v5  ;;  %845 = vmatprep.mubr.f32.mxu0 %v2958_v0 }
 0x347   :  { %1802 = vmatpush3.msra.mxu1 %v2966_v6  ;;  %1803 = vmatprep.mubr.msk.f32.mxu1 %vm2120_vm0, %v2958_v0 }
 0x348   :  { %950 = vmatprep.subr.mxu0 %v2967_v7  ;;  %1806 = vmatprep.subr.mxu1 %v2958_v0 }
 0x3e7   :  { %v678_v9 = vpop.f32.mrf.mxu0  ;;  %v749_v10 = vpop.f32.mrf.mxu1 }
 0x3e8   :  { %v753_v11 = vadd.f32 %v678_v9, %v609_v8  ;;  %v767_v49 = vadd.f32 %v2387_v62, %v749_v10  ;;  %v2619_v8 = vld [vmem:[#allocation2 + $0x158] sm:$0xff]  ;;  %v2623_v9 = vld [vmem:[#allocation2 + $0x150] sm:$0xff]  ;;  %v2639_v10 = vld [vmem:[#allocation2 + $0x120] sm:$0xff] }
 0x3e9   :  { %v1770_v12 = vpop.f32.mrf.mxu1  ;;  %v680_v53 = vpop.f32.mrf.mxu0 }
 0x3ea   :  { %v1484_v13 = vmul.f32 -1.442695, %v753_v11  ;;  %v754_v1 = vadd.f32 %v680_v53, %v610_v47  ;;  %v2647_v11 = vld [vmem:[#allocation2 + $0x108] sm:$0xff]  ;;  %v2655_v12 = vld [vmem:[#allocation2 + $0xf0] sm:$0xff]  ;;  %v2748_v47 = vld [vmem:[#allocation2 + $0x100] sm:$0xff] }
 0x3eb   :  { %v2753_v53 = vld [vmem:[#allocation2 + $0xd8] sm:$0xff] }
 0x3ec   :  { %1950 = vpow2.f32 %v1484_v13  ;;  %v1485_v41 = vmul.f32 -1.442695, %v754_v1  ;;  %v2742_v13 = vld [vmem:[#allocation2 + $0x118] sm:$0xff]  ;;  %v2756_v1 = vld [vmem:[#allocation2 + $0xe8] sm:$0xff] }
 0x3ee   :  { %1952 = vpow2.f32 %v1485_v41  ;;  %v2759_v41 = vld [vmem:[#allocation2 + $0xc8] sm:$0xff] }
 0x3f9   :  { %v1951_v43 = vpop.eup %1950 }
 0x3fa   :  { %v761_v48 = vadd.f32 1.0, %v1951_v43  ;;  %v2763_v43 = vld [vmem:[#allocation2 + $0xc0] sm:$0xff] }
 0x3fb   :  { %v1953_v54 = vpop.eup %1952 }
 0x3fc   :  { %1954 = vrcp.f32 %v761_v48  ;;  %v762_v61 = vadd.f32 1.0, %v1953_v54  ;;  %v2766_v48 = vld [vmem:[#allocation2 + $0xd0] sm:$0xff] }
 0x3fd   :  { %v2769_v54 = vld [vmem:[#allocation2 + $0xb0] sm:$0xff] }
 0x3fe   :  { %1956 = vrcp.f32 %v762_v61  ;;  %v2773_v61 = vld [vmem:[#allocation2 + $0xa8] sm:$0xff] }
 0x409   :  { %v1955_v50 = vpop.eup %1954 }
 0x40a   :  { %v768_v52 = vmul.f32 %v1955_v50, %v767_v49  ;;  %v2776_v49 = vld [vmem:[#allocation2 + $0xb8] sm:$0xff] }
 0x40b   :  { %v1957_v63 = vpop.eup %1956  ;;  %v2779_v50 = vld [vmem:[#allocation2 + $0x98] sm:$0xff] }
 0x40c   :  { %v769_v60 = vadd.f32 %v768_v52, %v611_v51  ;;  %v771_v55 = vsub.f32 1.0, %v1957_v63  ;;  %v773_v59 = vmul.f32 %v1957_v63, %v2538_v56  ;;  %v2627_v56 = vld [vmem:[#allocation2 + $0x140] sm:$0xff]  ;;  %v2783_v51 = vld [vmem:[#allocation2 + $0x90] sm:$0xff]  ;;  %v2793_v63 = vld [vmem:[#allocation2 + $0x78] sm:$0xff] }
 0x40d   :  { %v2786_v52 = vld [vmem:[#allocation2 + $0xa0] sm:$0xff] }
 0x40e   :  { %1958 = vtanh.f32 %v769_v60  ;;  %v2789_v60 = vld [vmem:[#allocation2 + $0x80] sm:$0xff] }
 0x41b   :  { %v1959_v57 = vpop.eup %1958 }
 0x41c   :  { %v772_v58 = vmul.f32 %v1959_v57, %v771_v55  ;;  %v2796_v55 = vld [vmem:[#allocation2 + $0x88] sm:$0xff] }
 0x41d   :  { %v2799_v57 = vld [vmem:[#allocation2 + $0x68] sm:$0xff] }
 0x41e   :  { %v2612_v7 = vadd.f32 %v773_v59, %v772_v58  ;;  %v2803_v58 = vld [vmem:[#allocation2 + $0x60] sm:$0xff]  ;;  %v2806_v59 = vld [vmem:[#allocation2 + $0x70] sm:$0xff] }
 0x420   :  { %776 = vst [vmem:[#allocation8 + $0x18] sm:$0xff] %v2612_v7  ;;  %846 = vmatmul.mubr.f32.vlgmr.msra.gmra.mxu0 %v2612_v7  ;;  %1804 = vmatmul.mubr.f32.vlgmr.msra.gmra.mxu1 %v2612_v7 }
 0x421   :  { %951 = vmatpush1.msra.mxu0 %v2156_v2  ;;  %1807 = vmatpush3.msra.mxu1 %v2190_v14  ;;  %v2631_v2 = vld [vmem:[#allocation2 + $0x138] sm:$0xff]  ;;  %v2635_v14 = vld [vmem:[#allocation2 + $0x128] sm:$0xff] }
 0x422   :  { %952 = vmatprep.subr.mxu0 %v2619_v8  ;;  %1808 = vmatprep.subr.mxu1 %v2958_v0 }
 0x423   :  { %953 = vmatpush1.msra.mxu0 %v2623_v9  ;;  %1809 = vmatpush3.msra.mxu1 %v2196_v16  ;;  %v2643_v16 = vld [vmem:[#allocation2 + $0x110] sm:$0xff] }
 0x424   :  { %954 = vmatprep.subr.mxu0 %v2627_v56  ;;  %1810 = vmatprep.subr.mxu1 %v2958_v0 }
 0x425   :  { %955 = vmatpush1.msra.mxu0 %v2631_v2  ;;  %1811 = vmatpush3.msra.mxu1 %v2202_v18  ;;  %v2651_v18 = vld [vmem:[#allocation2 + $0xf8] sm:$0xff] }
 0x426   :  { %956 = vmatprep.subr.mxu0 %v2635_v14  ;;  %1812 = vmatprep.subr.mxu1 %v2958_v0 }
 0x427   :  { %957 = vmatpush1.msra.mxu0 %v2639_v10  ;;  %1813 = vmatpush3.msra.mxu1 %v2212_v21  ;;  %v2659_v21 = vld [vmem:[#allocation2 + $0xe0] sm:$0xff] }
 0x428   :  { %958 = vmatprep.subr.mxu0 %v2643_v16  ;;  %1814 = vmatprep.subr.mxu1 %v2958_v0 }
 0x429   :  { %959 = vmatpush1.msra.mxu0 %v2647_v11  ;;  %1815 = vmatpush3.msra.mxu1 %v2222_v24 }
 0x42a   :  { %960 = vmatprep.subr.mxu0 %v2651_v18  ;;  %1816 = vmatprep.subr.mxu1 %v2958_v0 }
 0x42b   :  { %961 = vmatpush1.msra.mxu0 %v2655_v12  ;;  %1817 = vmatpush3.msra.mxu1 %v2232_v27 }
 0x42c   :  { %962 = vmatprep.subr.mxu0 %v2659_v21  ;;  %1818 = vmatprep.subr.mxu1 %v2958_v0 }
 0x42d   :  { %963 = vmatpush1.msra.mxu0 %v2193_v15  ;;  %1819 = vmatpush3.msra.mxu1 %v2242_v30  ;;  %v2704_v15 = vld [vmem:[#allocation2 + $0x170] sm:$0xff] }
 0x42e   :  { %964 = vmatprep.subr.mxu0 %v2199_v17  ;;  %1820 = vmatprep.subr.mxu1 %v2958_v0  ;;  %v778_v17 = vld [vmem:[#allocation5 + $0x60] sm:$0xff] }
 0x42f   :  { %965 = vmatpush1.msra.mxu0 %v2205_v19  ;;  %1821 = vmatpush3.msra.mxu1 %v2252_v33 }
 0x430   :  { %966 = vmatprep.subr.mxu0 %v2209_v20  ;;  %1822 = vmatprep.subr.mxu1 %v2958_v0 }
 0x431   :  { %967 = vmatpush1.msra.mxu0 %v2215_v22  ;;  %1823 = vmatpush3.msra.mxu1 %v2262_v36 }
 0x432   :  { %968 = vmatprep.subr.mxu0 %v2219_v23  ;;  %1824 = vmatprep.subr.mxu1 %v2958_v0 }
 0x433   :  { %969 = vmatpush1.msra.mxu0 %v2225_v25  ;;  %1825 = vmatpush3.msra.mxu1 %v2272_v39  ;;  %v779_v25 = vld [vmem:[#allocation5 + $0x68] sm:$0xff] }
 0x434   :  { %970 = vmatprep.subr.mxu0 %v2229_v26  ;;  %1826 = vmatprep.subr.mxu1 %v2958_v0 }
 0x435   :  { %971 = vmatpush1.msra.mxu0 %v2235_v28  ;;  %1827 = vmatpush3.msra.mxu1 %v2282_v42 }
 0x436   :  { %972 = vmatprep.subr.mxu0 %v2239_v29  ;;  %1828 = vmatprep.subr.mxu1 %v2958_v0 }
 0x437   :  { %973 = vmatpush1.msra.mxu0 %v2245_v31  ;;  %1829 = vmatpush3.msra.mxu1 %v2290_v44 }
 0x438   :  { %974 = vmatprep.subr.mxu0 %v2249_v32  ;;  %1830 = vmatprep.subr.mxu1 %v2958_v0 }
 0x439   :  { %975 = vmatpush1.msra.mxu0 %v2255_v34  ;;  %1831 = vmatpush3.msra.mxu1 %v2296_v45 }
 0x43a   :  { %976 = vmatprep.subr.mxu0 %v2259_v35  ;;  %1832 = vmatprep.subr.mxu1 %v2958_v0  ;;  %v780_v35 = vld [vmem:[#allocation5 + $0x70] sm:$0xff] }
 0x43b   :  { %977 = vmatpush1.msra.mxu0 %v2265_v37  ;;  %1833 = vmatpush3.msra.mxu1 %v2301_v46  ;;  %v2715_v46 = vld [vmem:[#allocation2 + $0x168] sm:$0xff] }
 0x43c   :  { %978 = vmatprep.subr.mxu0 %v2269_v38  ;;  %1834 = vmatprep.subr.mxu1 %v2958_v0 }
 0x43d   :  { %979 = vmatpush1.msra.mxu0 %v2275_v40  ;;  %1835 = vmatpush3.msra.mxu1 %v2963_v3  ;;  %v2718_v3 = vld [vmem:[#allocation2 + $0x178] sm:$0xff] }
 0x43e   :  { %980 = vmatprep.subr.mxu0 %v2964_v4  ;;  %1836 = vmatprep.subr.mxu1 %v2958_v0  ;;  %v2724_v4 = vld [vmem:[#allocation2 + $0x160] sm:$0xff] }
 0x43f   :  { %981 = vmatpush1.msra.mxu0 %v2965_v5  ;;  %1014 = vmatprep.mubr.f32.mxu0 %v2958_v0  ;;  %v2730_v5 = vld [vmem:[#allocation2 + $0x148] sm:$0xff] }
 0x440   :  { %1837 = vmatpush3.msra.mxu1 %v2966_v6  ;;  %1838 = vmatprep.mubr.msk.f32.mxu1 %vm2120_vm0, %v2958_v0  ;;  %v2736_v6 = vld [vmem:[#allocation2 + $0x130] sm:$0xff] }
 0x441   :  { %1119 = vmatprep.subr.mxu0 %v2704_v15  ;;  %1841 = vmatprep.subr.mxu1 %v2958_v0 }
 0x4e0   :  { %v847_v19 = vpop.f32.mrf.mxu0  ;;  %v918_v20 = vpop.f32.mrf.mxu1 }
 0x4e1   :  { %v922_v22 = vadd.f32 %v847_v19, %v778_v17  ;;  %v936_v33 = vadd.f32 %v2387_v62, %v918_v20  ;;  %v2813_v17 = vld [vmem:[#allocation2 + $0x48] sm:$0xff]  ;;  %v2816_v19 = vld [vmem:[#allocation2 + $0x58] sm:$0xff] }
 0x4e2   :  { %v1805_v23 = vpop.f32.mrf.mxu1  ;;  %v849_v26 = vpop.f32.mrf.mxu0  ;;  %v2819_v20 = vld [vmem:[#allocation2 + $0x38] sm:$0xff] }
 0x4e3   :  { %v1486_v24 = vmul.f32 -1.442695, %v922_v22  ;;  %v923_v27 = vadd.f32 %v849_v26, %v779_v25  ;;  %v2823_v22 = vld [vmem:[#allocation2 + $0x30] sm:$0xff]  ;;  %v2826_v23 = vld [vmem:[#allocation2 + $0x40] sm:$0xff]  ;;  %v2833_v25 = vld [vmem:[#allocation2 + $0x18] sm:$0xff] }
 0x4e4   :  { %v2836_v26 = vld [vmem:[#allocation2 + $0x28] sm:$0xff] }
 0x4e5   :  { %1960 = vpow2.f32 %v1486_v24  ;;  %v1487_v28 = vmul.f32 -1.442695, %v923_v27  ;;  %v2829_v24 = vld [vmem:[#allocation2 + $0x20] sm:$0xff]  ;;  %2968 = vst [vmem:[#allocation19_spill] sm:$0xff] %v2836_v26  ;;  %v2839_v27 = vld [vmem:[#allocation2 + $0x8] sm:$0xff] }
 0x4e6   :  { %2969 = vst [vmem:[#allocation17_spill] sm:$0xff] %v2839_v27 }
 0x4e7   :  { %1962 = vpow2.f32 %v1487_v28  ;;  %v2843_v28 = vld [vmem:[#allocation2] sm:$0xff] }
 0x4e8   :  { %2970 = vst [vmem:[#allocation18_spill] sm:$0xff] %v2843_v28 }
 0x4f2   :  { %v1961_v29 = vpop.eup %1960 }
 0x4f3   :  { %v930_v30 = vadd.f32 1.0, %v1961_v29  ;;  %v2847_v29 = vld [vmem:[#allocation2 + $0x10] sm:$0xff] }
 0x4f4   :  { %v1963_v31 = vpop.eup %1962  ;;  %2971 = vst [vmem:[#allocation20_spill] sm:$0xff] %v2847_v29 }
 0x4f5   :  { %1964 = vrcp.f32 %v930_v30  ;;  %v931_v32 = vadd.f32 1.0, %v1963_v31  ;;  %v947_v30 = vld [vmem:[#allocation5 + $0x78] sm:$0xff] }
 0x4f7   :  { %1966 = vrcp.f32 %v931_v32 }
 0x502   :  { %v1965_v34 = vpop.eup %1964 }
 0x503   :  { %v937_v36 = vmul.f32 %v1965_v34, %v936_v33 }
 0x504   :  { %v1967_v38 = vpop.eup %1966 }
 0x505   :  { %v938_v37 = vadd.f32 %v937_v36, %v780_v35  ;;  %v940_v39 = vsub.f32 1.0, %v1967_v38  ;;  %v942_v44 = vmul.f32 %v1967_v38, %v2612_v7  ;;  %v2809_v7 = vld [vmem:[#allocation2 + $0x50] sm:$0xff]  ;;  %v948_v36 = vld [vmem:[#allocation5 + $0x80] sm:$0xff] }
 0x507   :  { %1968 = vtanh.f32 %v938_v37 }
 0x514   :  { %v1969_v40 = vpop.eup %1968 }
 0x515   :  { %v941_v42 = vmul.f32 %v1969_v40, %v940_v39 }
 0x517   :  { %v2710_v45 = vadd.f32 %v942_v44, %v941_v42 }
 0x519   :  { %945 = vst [vmem:[#allocation8 + $0x20] sm:$0xff] %v2710_v45  ;;  %1015 = vmatmul.mubr.f32.vlgmr.msra.gmra.mxu0 %v2710_v45  ;;  %1839 = vmatmul.mubr.f32.vlgmr.msra.gmra.mxu1 %v2710_v45 }
 0x51a   :  { %1120 = vmatpush1.msra.mxu0 %v2715_v46  ;;  %1842 = vmatpush3.msra.mxu1 %v2718_v3 }
 0x51b   :  { %1121 = vmatprep.subr.mxu0 %v2619_v8  ;;  %1843 = vmatprep.subr.mxu1 %v2958_v0 }
 0x51c   :  { %1122 = vmatpush1.msra.mxu0 %v2623_v9  ;;  %1844 = vmatpush3.msra.mxu1 %v2724_v4 }
 0x51d   :  { %1123 = vmatprep.subr.mxu0 %v2627_v56  ;;  %1845 = vmatprep.subr.mxu1 %v2958_v0 }
 0x51e   :  { %1124 = vmatpush1.msra.mxu0 %v2631_v2  ;;  %1846 = vmatpush3.msra.mxu1 %v2730_v5 }
 0x51f   :  { %1125 = vmatprep.subr.mxu0 %v2635_v14  ;;  %1847 = vmatprep.subr.mxu1 %v2958_v0 }
 0x520   :  { %1126 = vmatpush1.msra.mxu0 %v2639_v10  ;;  %1848 = vmatpush3.msra.mxu1 %v2736_v6 }
 0x521   :  { %1127 = vmatprep.subr.mxu0 %v2643_v16  ;;  %1849 = vmatprep.subr.mxu1 %v2958_v0 }
 0x522   :  { %1128 = vmatpush1.msra.mxu0 %v2647_v11  ;;  %1850 = vmatpush3.msra.mxu1 %v2742_v13 }
 0x523   :  { %1129 = vmatprep.subr.mxu0 %v2651_v18  ;;  %1851 = vmatprep.subr.mxu1 %v2958_v0 }
 0x524   :  { %1130 = vmatpush1.msra.mxu0 %v2655_v12  ;;  %1852 = vmatpush3.msra.mxu1 %v2748_v47 }
 0x525   :  { %1131 = vmatprep.subr.mxu0 %v2659_v21  ;;  %1853 = vmatprep.subr.mxu1 %v2958_v0 }
 0x526   :  { %1132 = vmatpush1.msra.mxu0 %v2753_v53  ;;  %1854 = vmatpush3.msra.mxu1 %v2756_v1 }
 0x527   :  { %1133 = vmatprep.subr.mxu0 %v2759_v41  ;;  %1855 = vmatprep.subr.mxu1 %v2958_v0 }
 0x528   :  { %1134 = vmatpush1.msra.mxu0 %v2763_v43  ;;  %1856 = vmatpush3.msra.mxu1 %v2766_v48 }
 0x529   :  { %1135 = vmatprep.subr.mxu0 %v2769_v54  ;;  %1857 = vmatprep.subr.mxu1 %v2958_v0 }
 0x52a   :  { %1136 = vmatpush1.msra.mxu0 %v2773_v61  ;;  %1858 = vmatpush3.msra.mxu1 %v2776_v49 }
 0x52b   :  { %1137 = vmatprep.subr.mxu0 %v2779_v50  ;;  %1859 = vmatprep.subr.mxu1 %v2958_v0 }
 0x52c   :  { %1138 = vmatpush1.msra.mxu0 %v2783_v51  ;;  %1860 = vmatpush3.msra.mxu1 %v2786_v52 }
 0x52d   :  { %1139 = vmatprep.subr.mxu0 %v2789_v60  ;;  %1861 = vmatprep.subr.mxu1 %v2958_v0 }
 0x52e   :  { %1140 = vmatpush1.msra.mxu0 %v2793_v63  ;;  %1862 = vmatpush3.msra.mxu1 %v2796_v55 }
 0x52f   :  { %1141 = vmatprep.subr.mxu0 %v2799_v57  ;;  %1863 = vmatprep.subr.mxu1 %v2958_v0 }
 0x530   :  { %1142 = vmatpush1.msra.mxu0 %v2803_v58  ;;  %1864 = vmatpush3.msra.mxu1 %v2806_v59 }
 0x531   :  { %1143 = vmatprep.subr.mxu0 %v2809_v7  ;;  %1865 = vmatprep.subr.mxu1 %v2958_v0 }
 0x532   :  { %1144 = vmatpush1.msra.mxu0 %v2813_v17  ;;  %1866 = vmatpush3.msra.mxu1 %v2816_v19 }
 0x533   :  { %1145 = vmatprep.subr.mxu0 %v2819_v20  ;;  %1867 = vmatprep.subr.mxu1 %v2958_v0 }
 0x534   :  { %1146 = vmatpush1.msra.mxu0 %v2823_v22  ;;  %1868 = vmatpush3.msra.mxu1 %v2826_v23 }
 0x535   :  { %1147 = vmatprep.subr.mxu0 %v2829_v24  ;;  %1869 = vmatprep.subr.mxu1 %v2958_v0 }
 0x536   :  { %1148 = vmatpush1.msra.mxu0 %v2833_v25  ;;  %1870 = vmatpush3.msra.mxu1 %v2836_v26 }
 0x537   :  { %1149 = vmatprep.subr.mxu0 %v2839_v27  ;;  %1871 = vmatprep.subr.mxu1 %v2958_v0  ;;  %v949_v27 = vld [vmem:[#allocation5 + $0x88] sm:$0xff] }
 0x538   :  { %1150 = vmatpush1.msra.mxu0 %v2843_v28  ;;  %1183 = vmatprep.mubr.f32.mxu0 %v2958_v0 }
 0x539   :  { %1872 = vmatpush3.msra.mxu1 %v2847_v29  ;;  %1873 = vmatprep.mubr.msk.f32.mxu1 %vm2120_vm0, %v2958_v0 }
 0x53a   :  { %1288 = vmatprep.subr.mxu0 %v2704_v15  ;;  %1876 = vmatprep.subr.mxu1 %v2958_v0 }
 0x5d9   :  { %v1016_v31 = vpop.f32.mrf.mxu0  ;;  %v1087_v32 = vpop.f32.mrf.mxu1 }
 0x5da   :  { %v1091_v33 = vadd.f32 %v1016_v31, %v947_v30  ;;  %v1105_v15 = vadd.f32 %v2387_v62, %v1087_v32  ;;  %v2972_v62 = vld [vmem:[#allocation19_spill] sm:$0xff] }
 0x5db   :  { %v1840_v34 = vpop.f32.mrf.mxu1  ;;  %v1018_v37 = vpop.f32.mrf.mxu0 }
 0x5dc   :  { %v1488_v35 = vmul.f32 -1.442695, %v1091_v33  ;;  %v1092_v38 = vadd.f32 %v1018_v37, %v948_v36 }
 0x5de   :  { %1970 = vpow2.f32 %v1488_v35  ;;  %v1489_v39 = vmul.f32 -1.442695, %v1092_v38 }
 0x5e0   :  { %1972 = vpow2.f32 %v1489_v39 }
 0x5eb   :  { %v1971_v40 = vpop.eup %1970 }
 0x5ec   :  { %v1099_v42 = vadd.f32 1.0, %v1971_v40 }
 0x5ed   :  { %v1973_v44 = vpop.eup %1972 }
 0x5ee   :  { %1974 = vrcp.f32 %v1099_v42  ;;  %v1100_v29 = vadd.f32 1.0, %v1973_v44 }
 0x5f0   :  { %1976 = vrcp.f32 %v1100_v29 }
 0x5fb   :  { %v1975_v28 = vpop.eup %1974 }
 0x5fc   :  { %v1106_v26 = vmul.f32 %v1975_v28, %v1105_v15 }
 0x5fd   :  { %v1977_v31 = vpop.eup %1976 }
 0x5fe   :  { %v1107_v30 = vadd.f32 %v1106_v26, %v949_v27  ;;  %v1109_v33 = vsub.f32 1.0, %v1977_v31  ;;  %v1111_v36 = vmul.f32 %v1977_v31, %v2710_v45  ;;  %v1287_v26 = vld [vmem:[#allocation5 + $0xb8] sm:$0xff] }
 0x600   :  { %1978 = vtanh.f32 %v1107_v30 }
 0x60d   :  { %v1979_v34 = vpop.eup %1978 }
 0x60e   :  { %v1110_v35 = vmul.f32 %v1979_v34, %v1109_v33 }
 0x610   :  { %v2856_v37 = vadd.f32 %v1111_v36, %v1110_v35 }
 0x612   :  { %1114 = vst [vmem:[#allocation8 + $0x28] sm:$0xff] %v2856_v37  ;;  %1184 = vmatmul.mubr.f32.vlgmr.msra.gmra.mxu0 %v2856_v37  ;;  %1874 = vmatmul.mubr.f32.vlgmr.msra.gmra.mxu1 %v2856_v37 }
 0x613   :  { %1289 = vmatpush1.msra.mxu0 %v2715_v46  ;;  %1877 = vmatpush3.msra.mxu1 %v2718_v3 }
 0x614   :  { %1290 = vmatprep.subr.mxu0 %v2619_v8  ;;  %1878 = vmatprep.subr.mxu1 %v2958_v0  ;;  %v2973_v8 = vld [vmem:[#allocation17_spill] sm:$0xff] }
 0x615   :  { %1291 = vmatpush1.msra.mxu0 %v2623_v9  ;;  %1879 = vmatpush3.msra.mxu1 %v2724_v4  ;;  %v2974_v9 = vld [vmem:[#allocation18_spill] sm:$0xff] }
 0x616   :  { %1292 = vmatprep.subr.mxu0 %v2627_v56  ;;  %1880 = vmatprep.subr.mxu1 %v2958_v0  ;;  %v2975_v56 = vld [vmem:[#allocation20_spill] sm:$0xff] }
 0x617   :  { %1293 = vmatpush1.msra.mxu0 %v2631_v2  ;;  %1881 = vmatpush3.msra.mxu1 %v2730_v5  ;;  %v1116_v2 = vld [vmem:[#allocation5 + $0x90] sm:$0xff] }
 0x618   :  { %1294 = vmatprep.subr.mxu0 %v2635_v14  ;;  %1882 = vmatprep.subr.mxu1 %v2958_v0 }
 0x619   :  { %1295 = vmatpush1.msra.mxu0 %v2639_v10  ;;  %1883 = vmatpush3.msra.mxu1 %v2736_v6 }
 0x61a   :  { %1296 = vmatprep.subr.mxu0 %v2643_v16  ;;  %1884 = vmatprep.subr.mxu1 %v2958_v0 }
 0x61b   :  { %1297 = vmatpush1.msra.mxu0 %v2647_v11  ;;  %1885 = vmatpush3.msra.mxu1 %v2742_v13 }
 0x61c   :  { %1298 = vmatprep.subr.mxu0 %v2651_v18  ;;  %1886 = vmatprep.subr.mxu1 %v2958_v0 }
 0x61d   :  { %1299 = vmatpush1.msra.mxu0 %v2655_v12  ;;  %1887 = vmatpush3.msra.mxu1 %v2748_v47  ;;  %v1117_v12 = vld [vmem:[#allocation5 + $0x98] sm:$0xff] }
 0x61e   :  { %1300 = vmatprep.subr.mxu0 %v2659_v21  ;;  %1888 = vmatprep.subr.mxu1 %v2958_v0 }
 0x61f   :  { %1301 = vmatpush1.msra.mxu0 %v2753_v53  ;;  %1889 = vmatpush3.msra.mxu1 %v2756_v1  ;;  %v1118_v53 = vld [vmem:[#allocation5 + $0xa0] sm:$0xff] }
 0x620   :  { %1302 = vmatprep.subr.mxu0 %v2759_v41  ;;  %1890 = vmatprep.subr.mxu1 %v2958_v0 }
 0x621   :  { %1303 = vmatpush1.msra.mxu0 %v2763_v43  ;;  %1891 = vmatpush3.msra.mxu1 %v2766_v48 }
 0x622   :  { %1304 = vmatprep.subr.mxu0 %v2769_v54  ;;  %1892 = vmatprep.subr.mxu1 %v2958_v0 }
 0x623   :  { %1305 = vmatpush1.msra.mxu0 %v2773_v61  ;;  %1893 = vmatpush3.msra.mxu1 %v2776_v49 }
 0x624   :  { %1306 = vmatprep.subr.mxu0 %v2779_v50  ;;  %1894 = vmatprep.subr.mxu1 %v2958_v0 }
 0x625   :  { %1307 = vmatpush1.msra.mxu0 %v2783_v51  ;;  %1895 = vmatpush3.msra.mxu1 %v2786_v52  ;;  %v1285_v51 = vld [vmem:[#allocation5 + $0xa8] sm:$0xff] }
 0x626   :  { %1308 = vmatprep.subr.mxu0 %v2789_v60  ;;  %1896 = vmatprep.subr.mxu1 %v2958_v0 }
 0x627   :  { %1309 = vmatpush1.msra.mxu0 %v2793_v63  ;;  %1897 = vmatpush3.msra.mxu1 %v2796_v55 }
 0x628   :  { %1310 = vmatprep.subr.mxu0 %v2799_v57  ;;  %1898 = vmatprep.subr.mxu1 %v2958_v0 }
 0x629   :  { %1311 = vmatpush1.msra.mxu0 %v2803_v58  ;;  %1899 = vmatpush3.msra.mxu1 %v2806_v59  ;;  %v1286_v58 = vld [vmem:[#allocation5 + $0xb0] sm:$0xff] }
 0x62a   :  { %1312 = vmatprep.subr.mxu0 %v2809_v7  ;;  %1900 = vmatprep.subr.mxu1 %v2958_v0 }
 0x62b   :  { %1313 = vmatpush1.msra.mxu0 %v2813_v17  ;;  %1901 = vmatpush3.msra.mxu1 %v2816_v19 }
 0x62c   :  { %1314 = vmatprep.subr.mxu0 %v2819_v20  ;;  %1902 = vmatprep.subr.mxu1 %v2958_v0 }
 0x62d   :  { %1315 = vmatpush1.msra.mxu0 %v2823_v22  ;;  %1903 = vmatpush3.msra.mxu1 %v2826_v23 }
 0x62e   :  { %1316 = vmatprep.subr.mxu0 %v2829_v24  ;;  %1904 = vmatprep.subr.mxu1 %v2958_v0 }
 0x62f   :  { %1317 = vmatpush1.msra.mxu0 %v2833_v25  ;;  %1905 = vmatpush3.msra.mxu1 %v2972_v62 }
 0x630   :  { %1318 = vmatprep.subr.mxu0 %v2973_v8  ;;  %1906 = vmatprep.subr.mxu1 %v2958_v0 }
 0x631   :  { %1319 = vmatpush1.msra.mxu0 %v2974_v9  ;;  %1352 = vmatprep.mubr.f32.mxu0 %v2958_v0 }
 0x632   :  { %1907 = vmatpush3.msra.mxu1 %v2975_v56  ;;  %1908 = vmatprep.mubr.msk.f32.mxu1 %vm2120_vm0, %v2958_v0  ;;  %v2048_v0 = vld [vmem:[%s2935_s2] ss:$0 sm:$0xff]  ;;  %s2121_s2 = smov [#allocation8]  }
 0x633   :  { %s1459_s26 = sshll.u32 %s2121_s2, 4  ;;  %s1460_s26 = int_to_ptr.vmem [resolvable:$true] %s1459_s26 }
 0x634   :  { %s2089_s27 = scalar_lea.vmem %s1460_s26, 1024  ;;  %p2094_p11 = scmp.lt.s32.totalorder %s1460_s26, %s1460_s26 }
 0x635   :  { %p2090_p10 = scmp.ne.s32.totalorder %s1460_s26, %s2089_s27  ;;  %p2095_p12 = scmp.lt.s32.totalorder %s2089_s27, %s2089_s27 }
 0x637   :  { %p2096_p13 = por %p2095_p12, %p2094_p11 }
 0x639   :  { %p2097_p0 = pnand %p2096_p13, %p2090_p10 }
 0x6d2   :  { %v1185_v14 = vpop.f32.mrf.mxu0  ;;  %v1256_v10 = vpop.f32.mrf.mxu1 }
 0x6d3   :  { %v1260_v16 = vadd.f32 %v1185_v14, %v1116_v2  ;;  %v1274_v13 = vadd.f32 %v2048_v0, %v1256_v10 }
 0x6d4   :  { %v1875_v11 = vpop.f32.mrf.mxu1  ;;  %v1187_v21 = vpop.f32.mrf.mxu0 }
 0x6d5   :  { %v1490_v18 = vmul.f32 -1.442695, %v1260_v16  ;;  %v1261_v45 = vadd.f32 %v1187_v21, %v1117_v12 }
 0x6d7   :  { %1980 = vpow2.f32 %v1490_v18  ;;  %v1491_v46 = vmul.f32 -1.442695, %v1261_v45 }
 0x6d9   :  { %1982 = vpow2.f32 %v1491_v46 }
 0x6e4   :  { %v1981_v3 = vpop.eup %1980 }
 0x6e5   :  { %v1268_v4 = vadd.f32 1.0, %v1981_v3 }
 0x6e6   :  { %v1983_v5 = vpop.eup %1982 }
 0x6e7   :  { %1984 = vrcp.f32 %v1268_v4  ;;  %v1269_v6 = vadd.f32 1.0, %v1983_v5 }
 0x6e9   :  { %1986 = vrcp.f32 %v1269_v6 }
 0x6f4   :  { %v1985_v47 = vpop.eup %1984 }
 0x6f5   :  { %v1275_v1 = vmul.f32 %v1985_v47, %v1274_v13 }
 0x6f6   :  { %v1987_v43 = vpop.eup %1986 }
 0x6f7   :  { %v1276_v41 = vadd.f32 %v1275_v1, %v1118_v53  ;;  %v1278_v48 = vsub.f32 1.0, %v1987_v43  ;;  %v1280_v49 = vmul.f32 %v1987_v43, %v2856_v37 }
 0x6f9   :  { %1988 = vtanh.f32 %v1276_v41 }
 0x706   :  { %v1989_v54 = vpop.eup %1988 }
 0x707   :  { %v1279_v61 = vmul.f32 %v1989_v54, %v1278_v48 }
 0x709   :  { %v1281_v50 = vadd.f32 %v1280_v49, %v1279_v61 }
 0x70b   :  { %1283 = vst [vmem:[#allocation8 + $0x30] sm:$0xff] %v1281_v50  ;;  %1353 = vmatmul.mubr.f32.vlgmr.msra.gmra.mxu0 %v1281_v50  ;;  %1909 = vmatmul.mubr.f32.vlgmr.msra.gmra.mxu1 %v1281_v50 }
 0x7cb   :  { %v1354_v52 = vpop.f32.mrf.mxu0  ;;  %v1425_v60 = vpop.f32.mrf.mxu1 }
 0x7cc   :  { %v1429_v63 = vadd.f32 %v1354_v52, %v1285_v51  ;;  %v1443_v24 = vadd.f32 %v2048_v0, %v1425_v60 }
 0x7cd   :  { %v1910_v55 = vpop.f32.mrf.mxu1  ;;  %v1356_v59 = vpop.f32.mrf.mxu0 }
 0x7ce   :  { %v1492_v57 = vmul.f32 -1.442695, %v1429_v63  ;;  %v1430_v7 = vadd.f32 %v1356_v59, %v1286_v58 }
 0x7d0   :  { %1990 = vpow2.f32 %v1492_v57  ;;  %v1493_v17 = vmul.f32 -1.442695, %v1430_v7 }
 0x7d2   :  { %1992 = vpow2.f32 %v1493_v17 }
 0x7dd   :  { %v1991_v19 = vpop.eup %1990 }
 0x7de   :  { %v1437_v20 = vadd.f32 1.0, %v1991_v19 }
 0x7df   :  { %v1993_v22 = vpop.eup %1992 }
 0x7e0   :  { %1994 = vrcp.f32 %v1437_v20  ;;  %v1438_v23 = vadd.f32 1.0, %v1993_v22 }
 0x7e2   :  { %1996 = vrcp.f32 %v1438_v23 }
 0x7ed   :  { %v1995_v25 = vpop.eup %1994 }
 0x7ee   :  { %v1444_v27 = vmul.f32 %v1995_v25, %v1443_v24 }
 0x7ef   :  { %v1997_v29 = vpop.eup %1996 }
 0x7f0   :  { %v1445_v28 = vadd.f32 %v1444_v27, %v1287_v26  ;;  %v1447_v32 = vsub.f32 1.0, %v1997_v29  ;;  %v1449_v40 = vmul.f32 %v1997_v29, %v1281_v50 }
 0x7f2   :  { %1998 = vtanh.f32 %v1445_v28 }
 0x7ff   :  { %v1999_v38 = vpop.eup %1998 }
 0x800   :  { %v1448_v39 = vmul.f32 %v1999_v38, %v1447_v32 }
 0x802   :  { %v1450_v42 = vadd.f32 %v1449_v40, %v1448_v39 }
 0x804   :  { %1452 = vst [vmem:[#allocation8 + $0x38] sm:$0xff] %v1450_v42 }
 0x805   :  { %2100 = shalt.err (!%p2097_p0)
}
 0x806   :  { %s2122_s28 = smov 128   ;;  %s2123_s29 = smov 8  }
 0x807   :  { %1465 = dma.vmem_to_hbm [thread:$0]  %s1460_s26, 1024, %s2936_s3, [#allocation7], %s2122_s28, %s2122_s28, %s2123_s29  }
 0x808   :  { %2113 = dma.done.wait [#allocation7], 1024  }
 0x809   :  { %2114 = vsyncadd [#allocation7], 4294966272 }
 0x80a   :  { %1469 = vsyncpa [#allocation6], 1 }
 0x80b   :  { %1470 = vsyncpa [#allocation7], 1 }
 0x80c   :  { %1471 = vsyncmov [#allocation3] }
 0x80f   :  { %s1472_s5 = vpop.sfrf %1471 }
 0x810   :  { %p1494_p1 = scmp.ne.s32.totalorder %s1472_s5, 0 }
 0x812   :  { %1476 = shalt.err (%p1494_p1)  }

</bundles_post_ra>
